<compile_context>
chip_gen: v6e
topology: v6e:2x2x1
jax: 0.10.0
libtpu: 0.0.40
codegen_flags: <defaults>
</compile_context>

<pallas_src>
import functools
import math

import jax
import jax.numpy as jnp
from jax.experimental import pallas as pl
from jax.experimental.pallas import tpu as pltpu


# ----------------------------------------------------------------------------
# Hyper-parameters (consistent with the module structure)
# ----------------------------------------------------------------------------
HP = dict(
    Parallel_Channels=[4, 4, 4],
    Parallel_Kernel=[[3, 3], [5, 1], [1, 5]],
    Parallel_Pool=[[2, 2], [2, 2], [2, 2]],
    LFLB_Channels=[8, 16],
    LFLB_Kernel=[[3, 3], [3, 3]],
    LFLB_Pool=[[2, 2], [2, 2]],
    Postnet_Channels=32,
    Emotions=4,
)

ACT_DTYPE = jnp.bfloat16          # inter-layer activations + conv weights
VMEM_LIMIT = 32 * 1024 * 1024     # safe on v5e / v6e / v7x


# ----------------------------------------------------------------------------
# Pallas kernels
# ----------------------------------------------------------------------------
def _conv_bn_relu_pool_kernel(x_ref, w_ref, scale_ref, shift_ref, pr_ref,
                              pc_ref, o_ref, *, kh, H):
    # One grid step == one batch image.
    #   x_ref:     (1, Hp, Wp*Cin)      bf16 (zero-padded NHWC slab)
    #   w_ref:     (kh, Wp*Cin, W*Cout) bf16 banded conv weights (one per dy)
    #   scale_ref: (1, W*Cout)          f32  BN scale, tiled over w
    #   shift_ref: (1, W*Cout)          f32  BN shift + folded conv bias
    #   pr_ref:    (Ho, H)              f32  row-pool matrix (carries 1/(ph*pw))
    #   pc_ref:    (W*Cout, Wo*Cout)    f32  col-pool (kron(pool, I_Cout))
    #   o_ref:     (1, Ho, Wo*Cout)     bf16
    xfull = x_ref[0]                                  # (Hp, Wp*Cin)
    wc = w_ref.shape[2]
    acc = jnp.zeros((H, wc), jnp.float32)
    for dy in range(kh):                              # conv = sum of shifted matmuls
        acc = acc + jnp.dot(xfull[dy:dy + H, :], w_ref[dy],
                            preferred_element_type=jnp.float32)
    # BatchNorm(eval) affine (+ folded conv bias) + ReLU, in f32
    y = jnp.maximum(acc * scale_ref[...] + shift_ref[...], 0.0)
    # AvgPool as two small matmuls (keeps MXU busy, lane-dense output)
    yc = jnp.dot(y, pc_ref[...], preferred_element_type=jnp.float32)
    pooled = jnp.dot(pr_ref[...], yc, preferred_element_type=jnp.float32)
    o_ref[0] = pooled.astype(o_ref.dtype)


def _tail_kernel(x_ref, w_ref, scale_ref, shift_ref, pr_ref, pc_ref,
                 fcw_ref, fcb_ref, o_ref):
    # Fused classifier: 1x1 Conv + BN + ReLU -> global mean(H,W) -> Linear.
    #   x_ref:   (1, Hf, Wf*C2) bf16
    #   w_ref:   (1, Wf*C2, Wf*Cpost) bf16 (block-diagonal 1x1 weights)
    #   pr_ref:  (1, Hf)  f32  (each entry 1/(Hf*Wf))
    #   pc_ref:  (Wf*Cpost, Cpost) f32 (kron(ones(Wf,1), I))
    #   fcw_ref: (Cpost, Emotions) f32 ; fcb_ref: (1, Emotions) f32
    #   o_ref:   (1, 1, Emotions) f32
    acc = jnp.dot(x_ref[0], w_ref[0], preferred_element_type=jnp.float32)
    y = jnp.maximum(acc * scale_ref[...] + shift_ref[...], 0.0)
    yc = jnp.dot(y, pc_ref[...], preferred_element_type=jnp.float32)
    m = jnp.dot(pr_ref[...], yc, preferred_element_type=jnp.float32)  # (1, Cpost)
    # TODO(synk): torch.nn.Dropout(p=0.3) is identity at inference; omitted.
    logits = jnp.dot(m, fcw_ref[...], preferred_element_type=jnp.float32) + fcb_ref[...]
    o_ref[0] = logits.astype(o_ref.dtype)


# ----------------------------------------------------------------------------
# pallas_call wrappers
# ----------------------------------------------------------------------------
def conv_pool_apply(x, blk):
    # x: (B, H, W, Cin)  ACT_DTYPE ; returns (B, Ho, Wo, Cout) ACT_DTYPE
    B, H, W, Cin = x.shape
    band, pr, pc = blk["band"], blk["pr"], blk["pc"]
    kh = band.shape[0]
    WpCin, WCout = band.shape[1], band.shape[2]
    Cout = WCout // W
    Wp = WpCin // Cin
    pad_w = (Wp - W) // 2
    pad_h = (kh - 1) // 2
    Hp = H + 2 * pad_h
    Ho = pr.shape[0]
    WoCout = pc.shape[1]
    Wo = WoCout // Cout

    xp = jnp.pad(x, ((0, 0), (pad_h, pad_h), (pad_w, pad_w), (0, 0)))
    xp = xp.reshape(B, Hp, Wp * Cin)          # contiguous reshape (no transpose)

    out = pl.pallas_call(
        functools.partial(_conv_bn_relu_pool_kernel, kh=kh, H=H),
        out_shape=jax.ShapeDtypeStruct((B, Ho, WoCout), ACT_DTYPE),
        grid=(B,),
        in_specs=[
            pl.BlockSpec((1, Hp, Wp * Cin), lambda b: (b, 0, 0)),
            pl.BlockSpec((kh, WpCin, WCout), lambda b: (0, 0, 0)),
            pl.BlockSpec((1, WCout), lambda b: (0, 0)),
            pl.BlockSpec((1, WCout), lambda b: (0, 0)),
            pl.BlockSpec((Ho, H), lambda b: (0, 0)),
            pl.BlockSpec((WCout, WoCout), lambda b: (0, 0)),
        ],
        out_specs=pl.BlockSpec((1, Ho, WoCout), lambda b: (b, 0, 0)),
        compiler_params=pltpu.CompilerParams(
            dimension_semantics=("parallel",),
            vmem_limit_bytes=VMEM_LIMIT,
        ),
    )(xp, band, blk["scale_row"], blk["shift_row"], pr, pc)
    return out.reshape(B, Ho, Wo, Cout)


def tail_apply(x, tail):
    # x: (B, Hf, Wf, C2) ACT_DTYPE ; returns (B, Emotions) f32
    B, Hf, Wf, C2 = x.shape
    band = tail["band"]
    WfCpost = band.shape[2]
    Cpost = WfCpost // Wf
    NE = tail["fc_w"].shape[1]
    xf = x.reshape(B, Hf, Wf * C2)

    out = pl.pallas_call(
        _tail_kernel,
        out_shape=jax.ShapeDtypeStruct((B, 1, NE), jnp.float32),
        grid=(B,),
        in_specs=[
            pl.BlockSpec((1, Hf, Wf * C2), lambda b: (b, 0, 0)),
            pl.BlockSpec((1, Wf * C2, WfCpost), lambda b: (0, 0, 0)),
            pl.BlockSpec((1, WfCpost), lambda b: (0, 0)),
            pl.BlockSpec((1, WfCpost), lambda b: (0, 0)),
            pl.BlockSpec((1, Hf), lambda b: (0, 0)),
            pl.BlockSpec((WfCpost, Cpost), lambda b: (0, 0)),
            pl.BlockSpec((Cpost, NE), lambda b: (0, 0)),
            pl.BlockSpec((1, NE), lambda b: (0, 0)),
        ],
        out_specs=pl.BlockSpec((1, 1, NE), lambda b: (b, 0, 0)),
        compiler_params=pltpu.CompilerParams(
            dimension_semantics=("parallel",),
            vmem_limit_bytes=VMEM_LIMIT,
        ),
    )(xf, band, tail["scale_row"], tail["shift_row"], tail["pr"], tail["pc"],
      tail["fc_w"], tail["fc_b"])
    return out.reshape(B, NE)


# ----------------------------------------------------------------------------
# Host-side preparation: banded weights, pooling matrices, BN folding
# ----------------------------------------------------------------------------
def make_banded_weight(w4, W):
    # w4: (kh, kw, Cin, Cout) -> (kh, Wp*Cin, W*Cout).
    # band[dy][(wp, ci), (w, co)] = w4[dy, wp - w, ci, co] for 0 <= wp-w < kw.
    kh, kw, cin, cout = w4.shape
    pad_w = (kw - 1) // 2
    Wp = W + 2 * pad_w
    wcols = jnp.arange(W)
    bands = []
    for dy in range(kh):
        m = jnp.zeros((Wp, cin, W, cout), jnp.float32)
        for dx in range(kw):
            m = m.at[wcols + dx, :, wcols, :].set(w4[dy, dx])
        bands.append(m.reshape(Wp * cin, W * cout))
    return jnp.stack(bands, axis=0)


def prepare_conv_block(p, H, W, pool):
    w4 = p["w4"]
    cout = w4.shape[-1]
    band = make_banded_weight(w4, W).astype(ACT_DTYPE)
    scale_row = jnp.tile(p["scale"], W).reshape(1, W * cout).astype(jnp.float32)
    shift_row = jnp.tile(p["shift"], W).reshape(1, W * cout).astype(jnp.float32)
    ph, pw = pool
    Ho, Wo = H // ph, W // pw
    pr = ((jnp.arange(H)[None, :] // ph) == jnp.arange(Ho)[:, None]
          ).astype(jnp.float32) / float(ph * pw)
    pc = jnp.kron(
        ((jnp.arange(W)[:, None] // pw) == jnp.arange(Wo)[None, :]).astype(jnp.float32),
        jnp.eye(cout, dtype=jnp.float32))
    return dict(band=band, scale_row=scale_row, shift_row=shift_row, pr=pr, pc=pc)


def prepare_tail(p_post, fc_w, fc_b, Hf, Wf):
    w4 = p_post["w4"]                                  # (1, 1, C2, Cpost)
    cpost = w4.shape[-1]
    band = make_banded_weight(w4, Wf).astype(ACT_DTYPE)     # block-diagonal
    scale_row = jnp.tile(p_post["scale"], Wf).reshape(1, Wf * cpost).astype(jnp.float32)
    shift_row = jnp.tile(p_post["shift"], Wf).reshape(1, Wf * cpost).astype(jnp.float32)
    pr = jnp.full((1, Hf), 1.0 / float(Hf * Wf), jnp.float32)
    pc = jnp.kron(jnp.ones((Wf, 1), jnp.float32), jnp.eye(cpost, dtype=jnp.float32))
    return dict(band=band, scale_row=scale_row, shift_row=shift_row, pr=pr, pc=pc,
                fc_w=fc_w.astype(jnp.float32),
                fc_b=fc_b.reshape(1, -1).astype(jnp.float32))


def pad_kernel_to(w4, kh_t, kw_t):
    kh, kw = w4.shape[0], w4.shape[1]
    dh, dw = (kh_t - kh) // 2, (kw_t - kw) // 2
    return jnp.pad(w4, ((dh, dh), (dw, dw), (0, 0), (0, 0)))


def merge_parallel(path_params, kh_t, kw_t):
    # zero-pad every parallel path's kernel to kh_t x kw_t (centered) and stack
    # along Cout; identical to running the paths separately + torch.cat(dim=1).
    w4 = jnp.concatenate([pad_kernel_to(p["w4"], kh_t, kw_t) for p in path_params],
                         axis=-1)
    scale = jnp.concatenate([p["scale"] for p in path_params])
    shift = jnp.concatenate([p["shift"] for p in path_params])
    return dict(w4=w4, scale=scale, shift=shift)


def prepare(params, H, W):
    pools = HP["Parallel_Pool"]
    assert all(p == pools[0] for p in pools), "parallel merge needs equal pools"
    kh_t = max(k[0] for k in HP["Parallel_Kernel"])
    kw_t = max(k[1] for k in HP["Parallel_Kernel"])

    prep = {"convs": []}
    merged = merge_parallel(params["parallel"], kh_t, kw_t)
    h, w = H, W
    prep["convs"].append(prepare_conv_block(merged, h, w, pools[0]))
    h, w = h // pools[0][0], w // pools[0][1]
    for p, pool in zip(params["lflb"], HP["LFLB_Pool"]):
        prep["convs"].append(prepare_conv_block(p, h, w, pool))
        h, w = h // pool[0], w // pool[1]
    prep["tail"] = prepare_tail(params["post"], params["fc_w"], params["fc_b"], h, w)
    return prep


# ----------------------------------------------------------------------------
# Deterministic parameter initialization (BN eval folding + conv-bias folding)
# ----------------------------------------------------------------------------
def init_block_params(key, cin, cout, kh, kw):
    ks = jax.random.split(key, 6)
    fan_in, fan_out = cin * kh * kw, cout * kh * kw
    gain = math.sqrt(2.0)                     # xavier_uniform, w_init_gain='relu'
    limit = gain * math.sqrt(6.0 / (fan_in + fan_out))
    w4 = jax.random.uniform(ks[0], (kh, kw, cin, cout), jnp.float32, -limit, limit)
    b = 0.05 * jax.random.normal(ks[1], (cout,), jnp.float32)
    gamma = 1.0 + 0.1 * jax.random.normal(ks[2], (cout,), jnp.float32)
    beta = 0.1 * jax.random.normal(ks[3], (cout,), jnp.float32)
    run_mean = 0.1 * jax.random.normal(ks[4], (cout,), jnp.float32)
    run_var = 1.0 + 0.1 * jax.random.uniform(ks[5], (cout,), jnp.float32)
    scale = gamma / jnp.sqrt(run_var + 1e-5)
    shift = beta - run_mean * scale + b * scale   # conv bias folded into BN shift
    return dict(w4=w4, scale=scale, shift=shift)


def init_params(key):
    keys = jax.random.split(key, 16)
    ki = 0
    params = {"parallel": [], "lflb": []}
    for c, (kh, kw) in zip(HP["Parallel_Channels"], HP["Parallel_Kernel"]):
        params["parallel"].append(init_block_params(keys[ki], 1, c, kh, kw))
        ki += 1
    prev = sum(HP["Parallel_Channels"])
    for c, (kh, kw) in zip(HP["LFLB_Channels"], HP["LFLB_Kernel"]):
        params["lflb"].append(init_block_params(keys[ki], prev, c, kh, kw))
        prev = c
        ki += 1
    params["post"] = init_block_params(keys[ki], prev, HP["Postnet_Channels"], 1, 1)
    ki += 1
    k1, k2 = jax.random.split(keys[ki])
    cpost, ne = HP["Postnet_Channels"], HP["Emotions"]
    lim = 1.0 / math.sqrt(cpost)
    params["fc_w"] = jax.random.uniform(k1, (cpost, ne), jnp.float32, -lim, lim)
    params["fc_b"] = jax.random.uniform(k2, (ne,), jnp.float32, -lim, lim)
    return params


# ----------------------------------------------------------------------------
# Light_SERNet forward (4 pallas_calls total)
# ----------------------------------------------------------------------------
def light_sernet_forward(features, prep):
    # features: (B, H, W); PyTorch does unsqueeze(1) -> we use NHWC (B, H, W, 1)
    x = features[..., None].astype(ACT_DTYPE)
    for blk in prep["convs"]:            # merged parallel paths, then LFLB stack
        x = conv_pool_apply(x, blk)
    return tail_apply(x, prep["tail"])   # 1x1 Block + mean + Dropout(id) + Linear


# ----------------------------------------------------------------------------
if __name__ == "__main__":
    key = jax.random.PRNGKey(0)
    kx, kp = jax.random.split(key)
    B, H, W = 2, 16, 16
    features = jax.random.normal(kx, (B, H, W), jnp.float32)
    params = init_params(kp)
    prep = prepare(params, H, W)

    fwd = jax.jit(light_sernet_forward)
    out = fwd(features, prep)
    out = jax.block_until_ready(out)
    assert out.shape == (B, HP["Emotions"])
    assert bool(jnp.all(jnp.isfinite(out)))
    print("KERNEL_OK")
</pallas_src>

<mosaic_0001>
module attributes {stable_mosaic.version = 11 : i64} {
  func.func @_conv_bn_relu_pool_kernel(%arg0: i32, %arg1: memref<1x20x20xbf16, #tpu.memory_space<vmem>>, %arg2: memref<5x20x192xbf16, #tpu.memory_space<vmem>>, %arg3: memref<1x192xf32, #tpu.memory_space<vmem>>, %arg4: memref<1x192xf32, #tpu.memory_space<vmem>>, %arg5: memref<8x16xf32, #tpu.memory_space<vmem>>, %arg6: memref<192x96xf32, #tpu.memory_space<vmem>>, %arg7: memref<1x8x96xbf16, #tpu.memory_space<vmem>>) attributes {dimension_semantics = [#tpu.dimension_semantics<parallel>], iteration_bounds = array<i64: 2>, scalar_prefetch = 0 : i64, scratch_operands = 0 : i64, tpu.core_type = #tpu.core_type<tc>, window_params = [{transform_indices = @transform_0, window_bounds = array<i64: 1, 20, 20>}, {pipeline_mode = #tpu.pipeline_mode<synchronous>, transform_indices = @transform_1, window_bounds = array<i64: 5, 20, 192>}, {pipeline_mode = #tpu.pipeline_mode<synchronous>, transform_indices = @transform_2, window_bounds = array<i64: 1, 192>}, {pipeline_mode = #tpu.pipeline_mode<synchronous>, transform_indices = @transform_3, window_bounds = array<i64: 1, 192>}, {pipeline_mode = #tpu.pipeline_mode<synchronous>, transform_indices = @transform_4, window_bounds = array<i64: 8, 16>}, {pipeline_mode = #tpu.pipeline_mode<synchronous>, transform_indices = @transform_5, window_bounds = array<i64: 192, 96>}, {transform_indices = @transform_6, window_bounds = array<i64: 1, 8, 96>}]} {
    %c0 = arith.constant 0 : index
    %c0_0 = arith.constant 0 : index
    %c0_1 = arith.constant 0 : index
    %0 = vector.load %arg1[%c0, %c0_0, %c0_1] : memref<1x20x20xbf16, #tpu.memory_space<vmem>>, vector<1x20x20xbf16>
    %1 = vector.shape_cast %0 : vector<1x20x20xbf16> to vector<20x20xbf16>
    %cst = arith.constant 0.000000e+00 : f32
    %2 = vector.broadcast %cst : f32 to vector<16x192xf32>
    %3 = vector.extract_strided_slice %1 {offsets = [0, 0], sizes = [16, 20], strides = [1, 1]} : vector<20x20xbf16> to vector<16x20xbf16>
    %c0_2 = arith.constant 0 : index
    %c0_3 = arith.constant 0 : index
    %c0_4 = arith.constant 0 : index
    %4 = vector.load %arg2[%c0_2, %c0_3, %c0_4] : memref<5x20x192xbf16, #tpu.memory_space<vmem>>, vector<1x20x192xbf16>
    %5 = vector.shape_cast %4 : vector<1x20x192xbf16> to vector<20x192xbf16>
    %cst_5 = arith.constant dense<0.000000e+00> : vector<16x192xf32>
    %6 = tpu.matmul %3, %5, %cst_5 {dimension_numbers = #tpu.dot_dimension_numbers<[1], [0], [0], [1], [0, 0, 1, 1], [], []>} : vector<16x20xbf16>, vector<20x192xbf16>, vector<16x192xf32> -> vector<16x192xf32>
    %7 = arith.addf %2, %6 : vector<16x192xf32>
    %8 = vector.extract_strided_slice %1 {offsets = [1, 0], sizes = [16, 20], strides = [1, 1]} : vector<20x20xbf16> to vector<16x20xbf16>
    %c1 = arith.constant 1 : index
    %c0_6 = arith.constant 0 : index
    %c0_7 = arith.constant 0 : index
    %9 = vector.load %arg2[%c1, %c0_6, %c0_7] : memref<5x20x192xbf16, #tpu.memory_space<vmem>>, vector<1x20x192xbf16>
    %10 = vector.shape_cast %9 : vector<1x20x192xbf16> to vector<20x192xbf16>
    %cst_8 = arith.constant dense<0.000000e+00> : vector<16x192xf32>
    %11 = tpu.matmul %8, %10, %cst_8 {dimension_numbers = #tpu.dot_dimension_numbers<[1], [0], [0], [1], [0, 0, 1, 1], [], []>} : vector<16x20xbf16>, vector<20x192xbf16>, vector<16x192xf32> -> vector<16x192xf32>
    %12 = arith.addf %7, %11 : vector<16x192xf32>
    %13 = vector.extract_strided_slice %1 {offsets = [2, 0], sizes = [16, 20], strides = [1, 1]} : vector<20x20xbf16> to vector<16x20xbf16>
    %c2 = arith.constant 2 : index
    %c0_9 = arith.constant 0 : index
    %c0_10 = arith.constant 0 : index
    %14 = vector.load %arg2[%c2, %c0_9, %c0_10] : memref<5x20x192xbf16, #tpu.memory_space<vmem>>, vector<1x20x192xbf16>
    %15 = vector.shape_cast %14 : vector<1x20x192xbf16> to vector<20x192xbf16>
    %cst_11 = arith.constant dense<0.000000e+00> : vector<16x192xf32>
    %16 = tpu.matmul %13, %15, %cst_11 {dimension_numbers = #tpu.dot_dimension_numbers<[1], [0], [0], [1], [0, 0, 1, 1], [], []>} : vector<16x20xbf16>, vector<20x192xbf16>, vector<16x192xf32> -> vector<16x192xf32>
    %17 = arith.addf %12, %16 : vector<16x192xf32>
    %18 = vector.extract_strided_slice %1 {offsets = [3, 0], sizes = [16, 20], strides = [1, 1]} : vector<20x20xbf16> to vector<16x20xbf16>
    %c3 = arith.constant 3 : index
    %c0_12 = arith.constant 0 : index
    %c0_13 = arith.constant 0 : index
    %19 = vector.load %arg2[%c3, %c0_12, %c0_13] : memref<5x20x192xbf16, #tpu.memory_space<vmem>>, vector<1x20x192xbf16>
    %20 = vector.shape_cast %19 : vector<1x20x192xbf16> to vector<20x192xbf16>
    %cst_14 = arith.constant dense<0.000000e+00> : vector<16x192xf32>
    %21 = tpu.matmul %18, %20, %cst_14 {dimension_numbers = #tpu.dot_dimension_numbers<[1], [0], [0], [1], [0, 0, 1, 1], [], []>} : vector<16x20xbf16>, vector<20x192xbf16>, vector<16x192xf32> -> vector<16x192xf32>
    %22 = arith.addf %17, %21 : vector<16x192xf32>
    %23 = vector.extract_strided_slice %1 {offsets = [4, 0], sizes = [16, 20], strides = [1, 1]} : vector<20x20xbf16> to vector<16x20xbf16>
    %c4 = arith.constant 4 : index
    %c0_15 = arith.constant 0 : index
    %c0_16 = arith.constant 0 : index
    %24 = vector.load %arg2[%c4, %c0_15, %c0_16] : memref<5x20x192xbf16, #tpu.memory_space<vmem>>, vector<1x20x192xbf16>
    %25 = vector.shape_cast %24 : vector<1x20x192xbf16> to vector<20x192xbf16>
    %cst_17 = arith.constant dense<0.000000e+00> : vector<16x192xf32>
    %26 = tpu.matmul %23, %25, %cst_17 {dimension_numbers = #tpu.dot_dimension_numbers<[1], [0], [0], [1], [0, 0, 1, 1], [], []>} : vector<16x20xbf16>, vector<20x192xbf16>, vector<16x192xf32> -> vector<16x192xf32>
    %27 = arith.addf %22, %26 : vector<16x192xf32>
    %c0_18 = arith.constant 0 : index
    %c0_19 = arith.constant 0 : index
    %28 = vector.load %arg3[%c0_18, %c0_19] : memref<1x192xf32, #tpu.memory_space<vmem>>, vector<1x192xf32>
    %29 = vector.broadcast %28 : vector<1x192xf32> to vector<16x192xf32>
    %30 = arith.mulf %27, %29 : vector<16x192xf32>
    %c0_20 = arith.constant 0 : index
    %c0_21 = arith.constant 0 : index
    %31 = vector.load %arg4[%c0_20, %c0_21] : memref<1x192xf32, #tpu.memory_space<vmem>>, vector<1x192xf32>
    %32 = vector.broadcast %31 : vector<1x192xf32> to vector<16x192xf32>
    %33 = arith.addf %30, %32 : vector<16x192xf32>
    %cst_22 = arith.constant 0.000000e+00 : f32
    %34 = vector.broadcast %cst_22 : f32 to vector<16x192xf32>
    %35 = arith.maximumf %33, %34 : vector<16x192xf32>
    %c0_23 = arith.constant 0 : index
    %c0_24 = arith.constant 0 : index
    %36 = vector.load %arg6[%c0_23, %c0_24] : memref<192x96xf32, #tpu.memory_space<vmem>>, vector<192x96xf32>
    %cst_25 = arith.constant dense<0.000000e+00> : vector<16x96xf32>
    %37 = tpu.matmul %35, %36, %cst_25 {dimension_numbers = #tpu.dot_dimension_numbers<[1], [0], [0], [1], [0, 0, 1, 1], [], []>} : vector<16x192xf32>, vector<192x96xf32>, vector<16x96xf32> -> vector<16x96xf32>
    %c0_26 = arith.constant 0 : index
    %c0_27 = arith.constant 0 : index
    %38 = vector.load %arg5[%c0_26, %c0_27] : memref<8x16xf32, #tpu.memory_space<vmem>>, vector<8x16xf32>
    %cst_28 = arith.constant dense<0.000000e+00> : vector<8x96xf32>
    %39 = tpu.matmul %38, %37, %cst_28 {dimension_numbers = #tpu.dot_dimension_numbers<[1], [0], [0], [1], [0, 0, 1, 1], [], []>} : vector<8x16xf32>, vector<16x96xf32>, vector<8x96xf32> -> vector<8x96xf32>
    %40 = arith.truncf %39 : vector<8x96xf32> to vector<8x96xbf16>
    %c0_29 = arith.constant 0 : index
    %c0_30 = arith.constant 0 : index
    %c0_31 = arith.constant 0 : index
    %41 = vector.load %arg7[%c0_29, %c0_30, %c0_31] : memref<1x8x96xbf16, #tpu.memory_space<vmem>>, vector<1x8x96xbf16>
    %42 = vector.shape_cast %41 : vector<1x8x96xbf16> to vector<8x96xbf16>
    %43 = vector.shape_cast %40 : vector<8x96xbf16> to vector<1x8x96xbf16>
    tpu.vector_store %arg7[%c0_29, %c0_30, %c0_31], %43 {strides = array<i32>} : memref<1x8x96xbf16, #tpu.memory_space<vmem>>, vector<1x8x96xbf16>,
    return
  }
  func.func @transform_0(%arg0: i32) -> (i32, i32, i32) {
    %c0_i32 = arith.constant 0 : i32
    %c0_i32_0 = arith.constant 0 : i32
    %c0_i32_1 = arith.constant 0 : i32
    return %arg0, %c0_i32, %c0_i32_0 : i32, i32, i32
  }
  func.func @transform_1(%arg0: i32) -> (i32, i32, i32) {
    %c0_i32 = arith.constant 0 : i32
    %c0_i32_0 = arith.constant 0 : i32
    %c0_i32_1 = arith.constant 0 : i32
    %c0_i32_2 = arith.constant 0 : i32
    return %c0_i32, %c0_i32_0, %c0_i32_1 : i32, i32, i32
  }
  func.func @transform_2(%arg0: i32) -> (i32, i32) {
    %c0_i32 = arith.constant 0 : i32
    %c0_i32_0 = arith.constant 0 : i32
    %c0_i32_1 = arith.constant 0 : i32
    return %c0_i32, %c0_i32_0 : i32, i32
  }
  func.func @transform_3(%arg0: i32) -> (i32, i32) {
    %c0_i32 = arith.constant 0 : i32
    %c0_i32_0 = arith.constant 0 : i32
    %c0_i32_1 = arith.constant 0 : i32
    return %c0_i32, %c0_i32_0 : i32, i32
  }
  func.func @transform_4(%arg0: i32) -> (i32, i32) {
    %c0_i32 = arith.constant 0 : i32
    %c0_i32_0 = arith.constant 0 : i32
    %c0_i32_1 = arith.constant 0 : i32
    return %c0_i32, %c0_i32_0 : i32, i32
  }
  func.func @transform_5(%arg0: i32) -> (i32, i32) {
    %c0_i32 = arith.constant 0 : i32
    %c0_i32_0 = arith.constant 0 : i32
    %c0_i32_1 = arith.constant 0 : i32
    return %c0_i32, %c0_i32_0 : i32, i32
  }
  func.func @transform_6(%arg0: i32) -> (i32, i32, i32) {
    %c0_i32 = arith.constant 0 : i32
    %c0_i32_0 = arith.constant 0 : i32
    %c0_i32_1 = arith.constant 0 : i32
    return %arg0, %c0_i32, %c0_i32_0 : i32, i32, i32
  }
}

module attributes {stable_mosaic.version = 11 : i64} {
  func.func @_conv_bn_relu_pool_kernel(%arg0: i32, %arg1: memref<1x10x120xbf16, #tpu.memory_space<vmem>>, %arg2: memref<3x120x64xbf16, #tpu.memory_space<vmem>>, %arg3: memref<1x64xf32, #tpu.memory_space<vmem>>, %arg4: memref<1x64xf32, #tpu.memory_space<vmem>>, %arg5: memref<4x8xf32, #tpu.memory_space<vmem>>, %arg6: memref<64x32xf32, #tpu.memory_space<vmem>>, %arg7: memref<1x4x32xbf16, #tpu.memory_space<vmem>>) attributes {dimension_semantics = [#tpu.dimension_semantics<parallel>], iteration_bounds = array<i64: 2>, scalar_prefetch = 0 : i64, scratch_operands = 0 : i64, tpu.core_type = #tpu.core_type<tc>, window_params = [{transform_indices = @transform_0, window_bounds = array<i64: 1, 10, 120>}, {pipeline_mode = #tpu.pipeline_mode<synchronous>, transform_indices = @transform_1, window_bounds = array<i64: 3, 120, 64>}, {pipeline_mode = #tpu.pipeline_mode<synchronous>, transform_indices = @transform_2, window_bounds = array<i64: 1, 64>}, {pipeline_mode = #tpu.pipeline_mode<synchronous>, transform_indices = @transform_3, window_bounds = array<i64: 1, 64>}, {pipeline_mode = #tpu.pipeline_mode<synchronous>, transform_indices = @transform_4, window_bounds = array<i64: 4, 8>}, {pipeline_mode = #tpu.pipeline_mode<synchronous>, transform_indices = @transform_5, window_bounds = array<i64: 64, 32>}, {transform_indices = @transform_6, window_bounds = array<i64: 1, 4, 32>}]} {
    %c0 = arith.constant 0 : index
    %c0_0 = arith.constant 0 : index
    %c0_1 = arith.constant 0 : index
    %0 = vector.load %arg1[%c0, %c0_0, %c0_1] : memref<1x10x120xbf16, #tpu.memory_space<vmem>>, vector<1x10x120xbf16>
    %1 = vector.shape_cast %0 : vector<1x10x120xbf16> to vector<10x120xbf16>
    %cst = arith.constant 0.000000e+00 : f32
    %2 = vector.broadcast %cst : f32 to vector<8x64xf32>
    %3 = vector.extract_strided_slice %1 {offsets = [0, 0], sizes = [8, 120], strides = [1, 1]} : vector<10x120xbf16> to vector<8x120xbf16>
    %c0_2 = arith.constant 0 : index
    %c0_3 = arith.constant 0 : index
    %c0_4 = arith.constant 0 : index
    %4 = vector.load %arg2[%c0_2, %c0_3, %c0_4] : memref<3x120x64xbf16, #tpu.memory_space<vmem>>, vector<1x120x64xbf16>
    %5 = vector.shape_cast %4 : vector<1x120x64xbf16> to vector<120x64xbf16>
    %cst_5 = arith.constant dense<0.000000e+00> : vector<8x64xf32>
    %6 = tpu.matmul %3, %5, %cst_5 {dimension_numbers = #tpu.dot_dimension_numbers<[1], [0], [0], [1], [0, 0, 1, 1], [], []>} : vector<8x120xbf16>, vector<120x64xbf16>, vector<8x64xf32> -> vector<8x64xf32>
    %7 = arith.addf %2, %6 : vector<8x64xf32>
    %8 = vector.extract_strided_slice %1 {offsets = [1, 0], sizes = [8, 120], strides = [1, 1]} : vector<10x120xbf16> to vector<8x120xbf16>
    %c1 = arith.constant 1 : index
    %c0_6 = arith.constant 0 : index
    %c0_7 = arith.constant 0 : index
    %9 = vector.load %arg2[%c1, %c0_6, %c0_7] : memref<3x120x64xbf16, #tpu.memory_space<vmem>>, vector<1x120x64xbf16>
    %10 = vector.shape_cast %9 : vector<1x120x64xbf16> to vector<120x64xbf16>
    %cst_8 = arith.constant dense<0.000000e+00> : vector<8x64xf32>
    %11 = tpu.matmul %8, %10, %cst_8 {dimension_numbers = #tpu.dot_dimension_numbers<[1], [0], [0], [1], [0, 0, 1, 1], [], []>} : vector<8x120xbf16>, vector<120x64xbf16>, vector<8x64xf32> -> vector<8x64xf32>
    %12 = arith.addf %7, %11 : vector<8x64xf32>
    %13 = vector.extract_strided_slice %1 {offsets = [2, 0], sizes = [8, 120], strides = [1, 1]} : vector<10x120xbf16> to vector<8x120xbf16>
    %c2 = arith.constant 2 : index
    %c0_9 = arith.constant 0 : index
    %c0_10 = arith.constant 0 : index
    %14 = vector.load %arg2[%c2, %c0_9, %c0_10] : memref<3x120x64xbf16, #tpu.memory_space<vmem>>, vector<1x120x64xbf16>
    %15 = vector.shape_cast %14 : vector<1x120x64xbf16> to vector<120x64xbf16>
    %cst_11 = arith.constant dense<0.000000e+00> : vector<8x64xf32>
    %16 = tpu.matmul %13, %15, %cst_11 {dimension_numbers = #tpu.dot_dimension_numbers<[1], [0], [0], [1], [0, 0, 1, 1], [], []>} : vector<8x120xbf16>, vector<120x64xbf16>, vector<8x64xf32> -> vector<8x64xf32>
    %17 = arith.addf %12, %16 : vector<8x64xf32>
    %c0_12 = arith.constant 0 : index
    %c0_13 = arith.constant 0 : index
    %18 = vector.load %arg3[%c0_12, %c0_13] : memref<1x64xf32, #tpu.memory_space<vmem>>, vector<1x64xf32>
    %19 = vector.broadcast %18 : vector<1x64xf32> to vector<8x64xf32>
    %20 = arith.mulf %17, %19 : vector<8x64xf32>
    %c0_14 = arith.constant 0 : index
    %c0_15 = arith.constant 0 : index
    %21 = vector.load %arg4[%c0_14, %c0_15] : memref<1x64xf32, #tpu.memory_space<vmem>>, vector<1x64xf32>
    %22 = vector.broadcast %21 : vector<1x64xf32> to vector<8x64xf32>
    %23 = arith.addf %20, %22 : vector<8x64xf32>
    %cst_16 = arith.constant 0.000000e+00 : f32
    %24 = vector.broadcast %cst_16 : f32 to vector<8x64xf32>
    %25 = arith.maximumf %23, %24 : vector<8x64xf32>
    %c0_17 = arith.constant 0 : index
    %c0_18 = arith.constant 0 : index
    %26 = vector.load %arg6[%c0_17, %c0_18] : memref<64x32xf32, #tpu.memory_space<vmem>>, vector<64x32xf32>
    %cst_19 = arith.constant dense<0.000000e+00> : vector<8x32xf32>
    %27 = tpu.matmul %25, %26, %cst_19 {dimension_numbers = #tpu.dot_dimension_numbers<[1], [0], [0], [1], [0, 0, 1, 1], [], []>} : vector<8x64xf32>, vector<64x32xf32>, vector<8x32xf32> -> vector<8x32xf32>
    %c0_20 = arith.constant 0 : index
    %c0_21 = arith.constant 0 : index
    %28 = vector.load %arg5[%c0_20, %c0_21] : memref<4x8xf32, #tpu.memory_space<vmem>>, vector<4x8xf32>
    %cst_22 = arith.constant dense<0.000000e+00> : vector<4x32xf32>
    %29 = tpu.matmul %28, %27, %cst_22 {dimension_numbers = #tpu.dot_dimension_numbers<[1], [0], [0], [1], [0, 0, 1, 1], [], []>} : vector<4x8xf32>, vector<8x32xf32>, vector<4x32xf32> -> vector<4x32xf32>
    %30 = arith.truncf %29 : vector<4x32xf32> to vector<4x32xbf16>
    %c0_23 = arith.constant 0 : index
    %c0_24 = arith.constant 0 : index
    %c0_25 = arith.constant 0 : index
    %31 = vector.load %arg7[%c0_23, %c0_24, %c0_25] : memref<1x4x32xbf16, #tpu.memory_space<vmem>>, vector<1x4x32xbf16>
    %32 = vector.shape_cast %31 : vector<1x4x32xbf16> to vector<4x32xbf16>
    %33 = vector.shape_cast %30 : vector<4x32xbf16> to vector<1x4x32xbf16>
    tpu.vector_store %arg7[%c0_23, %c0_24, %c0_25], %33 {strides = array<i32>} : memref<1x4x32xbf16, #tpu.memory_space<vmem>>, vector<1x4x32xbf16>,
    return
  }
  func.func @transform_0(%arg0: i32) -> (i32, i32, i32) {
    %c0_i32 = arith.constant 0 : i32
    %c0_i32_0 = arith.constant 0 : i32
    %c0_i32_1 = arith.constant 0 : i32
    return %arg0, %c0_i32, %c0_i32_0 : i32, i32, i32
  }
  func.func @transform_1(%arg0: i32) -> (i32, i32, i32) {
    %c0_i32 = arith.constant 0 : i32
    %c0_i32_0 = arith.constant 0 : i32
    %c0_i32_1 = arith.constant 0 : i32
    %c0_i32_2 = arith.constant 0 : i32
    return %c0_i32, %c0_i32_0, %c0_i32_1 : i32, i32, i32
  }
  func.func @transform_2(%arg0: i32) -> (i32, i32) {
    %c0_i32 = arith.constant 0 : i32
    %c0_i32_0 = arith.constant 0 : i32
    %c0_i32_1 = arith.constant 0 : i32
    return %c0_i32, %c0_i32_0 : i32, i32
  }
  func.func @transform_3(%arg0: i32) -> (i32, i32) {
    %c0_i32 = arith.constant 0 : i32
    %c0_i32_0 = arith.constant 0 : i32
    %c0_i32_1 = arith.constant 0 : i32
    return %c0_i32, %c0_i32_0 : i32, i32
  }
  func.func @transform_4(%arg0: i32) -> (i32, i32) {
    %c0_i32 = arith.constant 0 : i32
    %c0_i32_0 = arith.constant 0 : i32
    %c0_i32_1 = arith.constant 0 : i32
    return %c0_i32, %c0_i32_0 : i32, i32
  }
  func.func @transform_5(%arg0: i32) -> (i32, i32) {
    %c0_i32 = arith.constant 0 : i32
    %c0_i32_0 = arith.constant 0 : i32
    %c0_i32_1 = arith.constant 0 : i32
    return %c0_i32, %c0_i32_0 : i32, i32
  }
  func.func @transform_6(%arg0: i32) -> (i32, i32, i32) {
    %c0_i32 = arith.constant 0 : i32
    %c0_i32_0 = arith.constant 0 : i32
    %c0_i32_1 = arith.constant 0 : i32
    return %arg0, %c0_i32, %c0_i32_0 : i32, i32, i32
  }
}

module attributes {stable_mosaic.version = 11 : i64} {
  func.func @_tail_kernel(%arg0: i32, %arg1: memref<1x2x32xbf16, #tpu.memory_space<vmem>>, %arg2: memref<1x32x64xbf16, #tpu.memory_space<vmem>>, %arg3: memref<1x64xf32, #tpu.memory_space<vmem>>, %arg4: memref<1x64xf32, #tpu.memory_space<vmem>>, %arg5: memref<1x2xf32, #tpu.memory_space<vmem>>, %arg6: memref<64x32xf32, #tpu.memory_space<vmem>>, %arg7: memref<32x4xf32, #tpu.memory_space<vmem>>, %arg8: memref<1x4xf32, #tpu.memory_space<vmem>>, %arg9: memref<1x1x4xf32, #tpu.memory_space<vmem>>) attributes {dimension_semantics = [#tpu.dimension_semantics<parallel>], iteration_bounds = array<i64: 2>, scalar_prefetch = 0 : i64, scratch_operands = 0 : i64, tpu.core_type = #tpu.core_type<tc>, window_params = [{transform_indices = @transform_0, window_bounds = array<i64: 1, 2, 32>}, {pipeline_mode = #tpu.pipeline_mode<synchronous>, transform_indices = @transform_1, window_bounds = array<i64: 1, 32, 64>}, {pipeline_mode = #tpu.pipeline_mode<synchronous>, transform_indices = @transform_2, window_bounds = array<i64: 1, 64>}, {pipeline_mode = #tpu.pipeline_mode<synchronous>, transform_indices = @transform_3, window_bounds = array<i64: 1, 64>}, {pipeline_mode = #tpu.pipeline_mode<synchronous>, transform_indices = @transform_4, window_bounds = array<i64: 1, 2>}, {pipeline_mode = #tpu.pipeline_mode<synchronous>, transform_indices = @transform_5, window_bounds = array<i64: 64, 32>}, {pipeline_mode = #tpu.pipeline_mode<synchronous>, transform_indices = @transform_6, window_bounds = array<i64: 32, 4>}, {pipeline_mode = #tpu.pipeline_mode<synchronous>, transform_indices = @transform_7, window_bounds = array<i64: 1, 4>}, {transform_indices = @transform_8, window_bounds = array<i64: 1, 1, 4>}]} {
    %c0 = arith.constant 0 : index
    %c0_0 = arith.constant 0 : index
    %c0_1 = arith.constant 0 : index
    %0 = vector.load %arg1[%c0, %c0_0, %c0_1] : memref<1x2x32xbf16, #tpu.memory_space<vmem>>, vector<1x2x32xbf16>
    %1 = vector.shape_cast %0 : vector<1x2x32xbf16> to vector<2x32xbf16>
    %c0_2 = arith.constant 0 : index
    %c0_3 = arith.constant 0 : index
    %c0_4 = arith.constant 0 : index
    %2 = vector.load %arg2[%c0_2, %c0_3, %c0_4] : memref<1x32x64xbf16, #tpu.memory_space<vmem>>, vector<1x32x64xbf16>
    %3 = vector.shape_cast %2 : vector<1x32x64xbf16> to vector<32x64xbf16>
    %cst = arith.constant dense<0.000000e+00> : vector<2x64xf32>
    %4 = tpu.matmul %1, %3, %cst {dimension_numbers = #tpu.dot_dimension_numbers<[1], [0], [0], [1], [0, 0, 1, 1], [], []>} : vector<2x32xbf16>, vector<32x64xbf16>, vector<2x64xf32> -> vector<2x64xf32>
    %c0_5 = arith.constant 0 : index
    %c0_6 = arith.constant 0 : index
    %5 = vector.load %arg3[%c0_5, %c0_6] : memref<1x64xf32, #tpu.memory_space<vmem>>, vector<1x64xf32>
    %6 = vector.broadcast %5 : vector<1x64xf32> to vector<2x64xf32>
    %7 = arith.mulf %4, %6 : vector<2x64xf32>
    %c0_7 = arith.constant 0 : index
    %c0_8 = arith.constant 0 : index
    %8 = vector.load %arg4[%c0_7, %c0_8] : memref<1x64xf32, #tpu.memory_space<vmem>>, vector<1x64xf32>
    %9 = vector.broadcast %8 : vector<1x64xf32> to vector<2x64xf32>
    %10 = arith.addf %7, %9 : vector<2x64xf32>
    %cst_9 = arith.constant 0.000000e+00 : f32
    %11 = vector.broadcast %cst_9 : f32 to vector<2x64xf32>
    %12 = arith.maximumf %10, %11 : vector<2x64xf32>
    %c0_10 = arith.constant 0 : index
    %c0_11 = arith.constant 0 : index
    %13 = vector.load %arg6[%c0_10, %c0_11] : memref<64x32xf32, #tpu.memory_space<vmem>>, vector<64x32xf32>
    %cst_12 = arith.constant dense<0.000000e+00> : vector<2x32xf32>
    %14 = tpu.matmul %12, %13, %cst_12 {dimension_numbers = #tpu.dot_dimension_numbers<[1], [0], [0], [1], [0, 0, 1, 1], [], []>} : vector<2x64xf32>, vector<64x32xf32>, vector<2x32xf32> -> vector<2x32xf32>
    %c0_13 = arith.constant 0 : index
    %c0_14 = arith.constant 0 : index
    %15 = vector.load %arg5[%c0_13, %c0_14] : memref<1x2xf32, #tpu.memory_space<vmem>>, vector<1x2xf32>
    %cst_15 = arith.constant dense<0.000000e+00> : vector<1x32xf32>
    %16 = tpu.matmul %15, %14, %cst_15 {dimension_numbers = #tpu.dot_dimension_numbers<[1], [0], [0], [1], [0, 0, 1, 1], [], []>} : vector<1x2xf32>, vector<2x32xf32>, vector<1x32xf32> -> vector<1x32xf32>
    %c0_16 = arith.constant 0 : index
    %c0_17 = arith.constant 0 : index
    %17 = vector.load %arg7[%c0_16, %c0_17] : memref<32x4xf32, #tpu.memory_space<vmem>>, vector<32x4xf32>
    %cst_18 = arith.constant dense<0.000000e+00> : vector<1x4xf32>
    %18 = tpu.matmul %16, %17, %cst_18 {dimension_numbers = #tpu.dot_dimension_numbers<[1], [0], [0], [1], [0, 0, 1, 1], [], []>} : vector<1x32xf32>, vector<32x4xf32>, vector<1x4xf32> -> vector<1x4xf32>
    %c0_19 = arith.constant 0 : index
    %c0_20 = arith.constant 0 : index
    %19 = vector.load %arg8[%c0_19, %c0_20] : memref<1x4xf32, #tpu.memory_space<vmem>>, vector<1x4xf32>
    %20 = arith.addf %18, %19 : vector<1x4xf32>
    %c0_21 = arith.constant 0 : index
    %c0_22 = arith.constant 0 : index
    %c0_23 = arith.constant 0 : index
    %21 = vector.load %arg9[%c0_21, %c0_22, %c0_23] : memref<1x1x4xf32, #tpu.memory_space<vmem>>, vector<1x1x4xf32>
    %22 = vector.shape_cast %21 : vector<1x1x4xf32> to vector<1x4xf32>
    %23 = vector.shape_cast %20 : vector<1x4xf32> to vector<1x1x4xf32>
    tpu.vector_store %arg9[%c0_21, %c0_22, %c0_23], %23 {strides = array<i32>} : memref<1x1x4xf32, #tpu.memory_space<vmem>>, vector<1x1x4xf32>,
    return
  }
  func.func @transform_0(%arg0: i32) -> (i32, i32, i32) {
    %c0_i32 = arith.constant 0 : i32
    %c0_i32_0 = arith.constant 0 : i32
    %c0_i32_1 = arith.constant 0 : i32
    return %arg0, %c0_i32, %c0_i32_0 : i32, i32, i32
  }
  func.func @transform_1(%arg0: i32) -> (i32, i32, i32) {
    %c0_i32 = arith.constant 0 : i32
    %c0_i32_0 = arith.constant 0 : i32
    %c0_i32_1 = arith.constant 0 : i32
    %c0_i32_2 = arith.constant 0 : i32
    return %c0_i32, %c0_i32_0, %c0_i32_1 : i32, i32, i32
  }
  func.func @transform_2(%arg0: i32) -> (i32, i32) {
    %c0_i32 = arith.constant 0 : i32
    %c0_i32_0 = arith.constant 0 : i32
    %c0_i32_1 = arith.constant 0 : i32
    return %c0_i32, %c0_i32_0 : i32, i32
  }
  func.func @transform_3(%arg0: i32) -> (i32, i32) {
    %c0_i32 = arith.constant 0 : i32
    %c0_i32_0 = arith.constant 0 : i32
    %c0_i32_1 = arith.constant 0 : i32
    return %c0_i32, %c0_i32_0 : i32, i32
  }
  func.func @transform_4(%arg0: i32) -> (i32, i32) {
    %c0_i32 = arith.constant 0 : i32
    %c0_i32_0 = arith.constant 0 : i32
    %c0_i32_1 = arith.constant 0 : i32
    return %c0_i32, %c0_i32_0 : i32, i32
  }
  func.func @transform_5(%arg0: i32) -> (i32, i32) {
    %c0_i32 = arith.constant 0 : i32
    %c0_i32_0 = arith.constant 0 : i32
    %c0_i32_1 = arith.constant 0 : i32
    return %c0_i32, %c0_i32_0 : i32, i32
  }
  func.func @transform_6(%arg0: i32) -> (i32, i32) {
    %c0_i32 = arith.constant 0 : i32
    %c0_i32_0 = arith.constant 0 : i32
    %c0_i32_1 = arith.constant 0 : i32
    return %c0_i32, %c0_i32_0 : i32, i32
  }
  func.func @transform_7(%arg0: i32) -> (i32, i32) {
    %c0_i32 = arith.constant 0 : i32
    %c0_i32_0 = arith.constant 0 : i32
    %c0_i32_1 = arith.constant 0 : i32
    return %c0_i32, %c0_i32_0 : i32, i32
  }
  func.func @transform_8(%arg0: i32) -> (i32, i32, i32) {
    %c0_i32 = arith.constant 0 : i32
    %c0_i32_0 = arith.constant 0 : i32
    %c0_i32_1 = arith.constant 0 : i32
    return %arg0, %c0_i32, %c0_i32_0 : i32, i32, i32
  }
}

module attributes {stable_mosaic.version = 11 : i64} {
  func.func @_conv_bn_relu_pool_kernel(%arg0: i32, %arg1: memref<1x6x48xbf16, #tpu.memory_space<vmem>>, %arg2: memref<3x48x64xbf16, #tpu.memory_space<vmem>>, %arg3: memref<1x64xf32, #tpu.memory_space<vmem>>, %arg4: memref<1x64xf32, #tpu.memory_space<vmem>>, %arg5: memref<2x4xf32, #tpu.memory_space<vmem>>, %arg6: memref<64x32xf32, #tpu.memory_space<vmem>>, %arg7: memref<1x2x32xbf16, #tpu.memory_space<vmem>>) attributes {dimension_semantics = [#tpu.dimension_semantics<parallel>], iteration_bounds = array<i64: 2>, scalar_prefetch = 0 : i64, scratch_operands = 0 : i64, tpu.core_type = #tpu.core_type<tc>, window_params = [{transform_indices = @transform_0, window_bounds = array<i64: 1, 6, 48>}, {pipeline_mode = #tpu.pipeline_mode<synchronous>, transform_indices = @transform_1, window_bounds = array<i64: 3, 48, 64>}, {pipeline_mode = #tpu.pipeline_mode<synchronous>, transform_indices = @transform_2, window_bounds = array<i64: 1, 64>}, {pipeline_mode = #tpu.pipeline_mode<synchronous>, transform_indices = @transform_3, window_bounds = array<i64: 1, 64>}, {pipeline_mode = #tpu.pipeline_mode<synchronous>, transform_indices = @transform_4, window_bounds = array<i64: 2, 4>}, {pipeline_mode = #tpu.pipeline_mode<synchronous>, transform_indices = @transform_5, window_bounds = array<i64: 64, 32>}, {transform_indices = @transform_6, window_bounds = array<i64: 1, 2, 32>}]} {
    %c0 = arith.constant 0 : index
    %c0_0 = arith.constant 0 : index
    %c0_1 = arith.constant 0 : index
    %0 = vector.load %arg1[%c0, %c0_0, %c0_1] : memref<1x6x48xbf16, #tpu.memory_space<vmem>>, vector<1x6x48xbf16>
    %1 = vector.shape_cast %0 : vector<1x6x48xbf16> to vector<6x48xbf16>
    %cst = arith.constant 0.000000e+00 : f32
    %2 = vector.broadcast %cst : f32 to vector<4x64xf32>
    %3 = vector.extract_strided_slice %1 {offsets = [0, 0], sizes = [4, 48], strides = [1, 1]} : vector<6x48xbf16> to vector<4x48xbf16>
    %c0_2 = arith.constant 0 : index
    %c0_3 = arith.constant 0 : index
    %c0_4 = arith.constant 0 : index
    %4 = vector.load %arg2[%c0_2, %c0_3, %c0_4] : memref<3x48x64xbf16, #tpu.memory_space<vmem>>, vector<1x48x64xbf16>
    %5 = vector.shape_cast %4 : vector<1x48x64xbf16> to vector<48x64xbf16>
    %cst_5 = arith.constant dense<0.000000e+00> : vector<4x64xf32>
    %6 = tpu.matmul %3, %5, %cst_5 {dimension_numbers = #tpu.dot_dimension_numbers<[1], [0], [0], [1], [0, 0, 1, 1], [], []>} : vector<4x48xbf16>, vector<48x64xbf16>, vector<4x64xf32> -> vector<4x64xf32>
    %7 = arith.addf %2, %6 : vector<4x64xf32>
    %8 = vector.extract_strided_slice %1 {offsets = [1, 0], sizes = [4, 48], strides = [1, 1]} : vector<6x48xbf16> to vector<4x48xbf16>
    %c1 = arith.constant 1 : index
    %c0_6 = arith.constant 0 : index
    %c0_7 = arith.constant 0 : index
    %9 = vector.load %arg2[%c1, %c0_6, %c0_7] : memref<3x48x64xbf16, #tpu.memory_space<vmem>>, vector<1x48x64xbf16>
    %10 = vector.shape_cast %9 : vector<1x48x64xbf16> to vector<48x64xbf16>
    %cst_8 = arith.constant dense<0.000000e+00> : vector<4x64xf32>
    %11 = tpu.matmul %8, %10, %cst_8 {dimension_numbers = #tpu.dot_dimension_numbers<[1], [0], [0], [1], [0, 0, 1, 1], [], []>} : vector<4x48xbf16>, vector<48x64xbf16>, vector<4x64xf32> -> vector<4x64xf32>
    %12 = arith.addf %7, %11 : vector<4x64xf32>
    %13 = vector.extract_strided_slice %1 {offsets = [2, 0], sizes = [4, 48], strides = [1, 1]} : vector<6x48xbf16> to vector<4x48xbf16>
    %c2 = arith.constant 2 : index
    %c0_9 = arith.constant 0 : index
    %c0_10 = arith.constant 0 : index
    %14 = vector.load %arg2[%c2, %c0_9, %c0_10] : memref<3x48x64xbf16, #tpu.memory_space<vmem>>, vector<1x48x64xbf16>
    %15 = vector.shape_cast %14 : vector<1x48x64xbf16> to vector<48x64xbf16>
    %cst_11 = arith.constant dense<0.000000e+00> : vector<4x64xf32>
    %16 = tpu.matmul %13, %15, %cst_11 {dimension_numbers = #tpu.dot_dimension_numbers<[1], [0], [0], [1], [0, 0, 1, 1], [], []>} : vector<4x48xbf16>, vector<48x64xbf16>, vector<4x64xf32> -> vector<4x64xf32>
    %17 = arith.addf %12, %16 : vector<4x64xf32>
    %c0_12 = arith.constant 0 : index
    %c0_13 = arith.constant 0 : index
    %18 = vector.load %arg3[%c0_12, %c0_13] : memref<1x64xf32, #tpu.memory_space<vmem>>, vector<1x64xf32>
    %19 = vector.broadcast %18 : vector<1x64xf32> to vector<4x64xf32>
    %20 = arith.mulf %17, %19 : vector<4x64xf32>
    %c0_14 = arith.constant 0 : index
    %c0_15 = arith.constant 0 : index
    %21 = vector.load %arg4[%c0_14, %c0_15] : memref<1x64xf32, #tpu.memory_space<vmem>>, vector<1x64xf32>
    %22 = vector.broadcast %21 : vector<1x64xf32> to vector<4x64xf32>
    %23 = arith.addf %20, %22 : vector<4x64xf32>
    %cst_16 = arith.constant 0.000000e+00 : f32
    %24 = vector.broadcast %cst_16 : f32 to vector<4x64xf32>
    %25 = arith.maximumf %23, %24 : vector<4x64xf32>
    %c0_17 = arith.constant 0 : index
    %c0_18 = arith.constant 0 : index
    %26 = vector.load %arg6[%c0_17, %c0_18] : memref<64x32xf32, #tpu.memory_space<vmem>>, vector<64x32xf32>
    %cst_19 = arith.constant dense<0.000000e+00> : vector<4x32xf32>
    %27 = tpu.matmul %25, %26, %cst_19 {dimension_numbers = #tpu.dot_dimension_numbers<[1], [0], [0], [1], [0, 0, 1, 1], [], []>} : vector<4x64xf32>, vector<64x32xf32>, vector<4x32xf32> -> vector<4x32xf32>
    %c0_20 = arith.constant 0 : index
    %c0_21 = arith.constant 0 : index
    %28 = vector.load %arg5[%c0_20, %c0_21] : memref<2x4xf32, #tpu.memory_space<vmem>>, vector<2x4xf32>
    %cst_22 = arith.constant dense<0.000000e+00> : vector<2x32xf32>
    %29 = tpu.matmul %28, %27, %cst_22 {dimension_numbers = #tpu.dot_dimension_numbers<[1], [0], [0], [1], [0, 0, 1, 1], [], []>} : vector<2x4xf32>, vector<4x32xf32>, vector<2x32xf32> -> vector<2x32xf32>
    %30 = arith.truncf %29 : vector<2x32xf32> to vector<2x32xbf16>
    %c0_23 = arith.constant 0 : index
    %c0_24 = arith.constant 0 : index
    %c0_25 = arith.constant 0 : index
    %31 = vector.load %arg7[%c0_23, %c0_24, %c0_25] : memref<1x2x32xbf16, #tpu.memory_space<vmem>>, vector<1x2x32xbf16>
    %32 = vector.shape_cast %31 : vector<1x2x32xbf16> to vector<2x32xbf16>
    %33 = vector.shape_cast %30 : vector<2x32xbf16> to vector<1x2x32xbf16>
    tpu.vector_store %arg7[%c0_23, %c0_24, %c0_25], %33 {strides = array<i32>} : memref<1x2x32xbf16, #tpu.memory_space<vmem>>, vector<1x2x32xbf16>,
    return
  }
  func.func @transform_0(%arg0: i32) -> (i32, i32, i32) {
    %c0_i32 = arith.constant 0 : i32
    %c0_i32_0 = arith.constant 0 : i32
    %c0_i32_1 = arith.constant 0 : i32
    return %arg0, %c0_i32, %c0_i32_0 : i32, i32, i32
  }
  func.func @transform_1(%arg0: i32) -> (i32, i32, i32) {
    %c0_i32 = arith.constant 0 : i32
    %c0_i32_0 = arith.constant 0 : i32
    %c0_i32_1 = arith.constant 0 : i32
    %c0_i32_2 = arith.constant 0 : i32
    return %c0_i32, %c0_i32_0, %c0_i32_1 : i32, i32, i32
  }
  func.func @transform_2(%arg0: i32) -> (i32, i32) {
    %c0_i32 = arith.constant 0 : i32
    %c0_i32_0 = arith.constant 0 : i32
    %c0_i32_1 = arith.constant 0 : i32
    return %c0_i32, %c0_i32_0 : i32, i32
  }
  func.func @transform_3(%arg0: i32) -> (i32, i32) {
    %c0_i32 = arith.constant 0 : i32
    %c0_i32_0 = arith.constant 0 : i32
    %c0_i32_1 = arith.constant 0 : i32
    return %c0_i32, %c0_i32_0 : i32, i32
  }
  func.func @transform_4(%arg0: i32) -> (i32, i32) {
    %c0_i32 = arith.constant 0 : i32
    %c0_i32_0 = arith.constant 0 : i32
    %c0_i32_1 = arith.constant 0 : i32
    return %c0_i32, %c0_i32_0 : i32, i32
  }
  func.func @transform_5(%arg0: i32) -> (i32, i32) {
    %c0_i32 = arith.constant 0 : i32
    %c0_i32_0 = arith.constant 0 : i32
    %c0_i32_1 = arith.constant 0 : i32
    return %c0_i32, %c0_i32_0 : i32, i32
  }
  func.func @transform_6(%arg0: i32) -> (i32, i32, i32) {
    %c0_i32 = arith.constant 0 : i32
    %c0_i32_0 = arith.constant 0 : i32
    %c0_i32_1 = arith.constant 0 : i32
    return %arg0, %c0_i32, %c0_i32_0 : i32, i32, i32
  }
}

</mosaic_0001>

<bundles_post_ra>
// kernel: light_sernet_forward.4
= control target key start
LH: loop header
LB: loop body
LE: loop exit
PB: predicated region body
PF: predicated region fallthrough
CT: control target
= control target key end

     0   :  { %11 = vsyncpa [#allocation3], 0  ;;  %s1402_s0 = inlined_call_operand.vmem [shape: bf16[2,20,20], index: 0, kind: input, shape index: {}]   ;;  %s1403_s1 = inlined_call_operand.vmem [shape: bf16[5,20,192], index: 1, kind: input, shape index: {}]   ;;  %s1404_s2 = inlined_call_operand.vmem [shape: f32[1,192], index: 2, kind: input, shape index: {}]   ;;  %s1405_s3 = inlined_call_operand.vmem [shape: f32[1,192], index: 3, kind: input, shape index: {}]   ;;  %s1406_s4 = inlined_call_operand.hbm [shape: f32[8,16], index: 4, kind: input, shape index: {}]   ;;  %s1407_s5 = inlined_call_operand.hbm [shape: f32[192,96], index: 5, kind: input, shape index: {}]   ;;  %s1408_s6 = inlined_call_operand.vmem [shape: bf16[2,8,96], index: 6, kind: output, shape index: {}]  }
   0x1   :  { %12 = vsyncpa [#allocation5], 0  ;;  %s1225_s21 = smov 0  }
   0x2 LB: > { %s1231_s22 = sadd.s32 4294967295, %s1181_s21   ;;  %p985_p0 = scmp.ge.s32.totalorder %s1181_s21, 1  ;;  %s1181_s21 = sphi %s1225_s21, %s18_s21  }
   0x3   : > { %p180_p1 = scmp.lt.s32.totalorder %s1181_s21, 3  ;;  %p1409_p2 = scmp.eq.s32.totalorder %s1231_s22, 0 }
   0x4   : > { %s1183_s23 = smov [#allocation2]   ;;  %s1184_s26 = smov [#allocation4]  }
   0x5   : > { %s202_s24 = sshll.u32 %s1183_s23, 4  ;;  %p1236_p3 = pnand %p985_p0, %p180_p1  ;;  %s203_s24 = int_to_ptr.vmem [resolvable:$true] %s202_s24 }
   0x6   : > { %s212_s27 = sshll.u32 %s1184_s26, 4  ;;  %s1126_s29 = scalar_lea.vmem %s203_s24, 128  ;;  %s213_s27 = int_to_ptr.vmem [resolvable:$true] %s212_s27 }
   0x7   : > { %s1411_s25 = scalar_select %p1236_p3, 1, 0 }
   0x8   : > { %p1062_p4 = pneg %p1236_p3  ;;  %p1127_p7 = scmp.ne.s32.totalorder %s203_s24, %s1126_s29 }
   0x9   : > { %p1134_p10 = scmp.lt.s32.totalorder %s203_s24, %s203_s24  ;;  %p1135_p11 = scmp.lt.s32.totalorder %s1126_s29, %s1126_s29 }
   0xa   : > { %p1244_p5 = pnand %p1409_p2, %p1062_p4 }
   0xb   : > { %p1136_p12 = por %p1135_p11, %p1134_p10 }
   0xc   : > { %p1117_p6 = pneg %p1244_p5 }
   0xe   : > { %p1129_p8 = pnand %p1127_p7, %p1117_p6 }
  0x10   : > { %p1130_p9 = pneg %p1129_p8 }
  0x12   : > { %p1137_p13 = pnand %p1136_p12, %p1130_p9 }
  0x14   : > { %1140 = shalt.err (!%p1137_p13)
}
  0x15   : > { %1065 = dma.hbm_to_vmem [thread:$0]  (!%p1244_p5), %s1406_s4, 128, %s203_s24, [#allocation3]  }
  0x16   : > { %s1152_s8 = scalar_lea.vmem %s213_s27, 3072  ;;  %p1160_p7 = scmp.lt.s32.totalorder %s213_s27, %s213_s27 }
  0x17   : > { %p1153_p0 = scmp.ne.s32.totalorder %s213_s27, %s1152_s8  ;;  %p1161_p8 = scmp.lt.s32.totalorder %s1152_s8, %s1152_s8 }
  0x19   : > { %p1155_p1 = pnand %p1153_p0, %p1117_p6  ;;  %p1162_p2 = por %p1161_p8, %p1160_p7 }
  0x1b   : > { %p1156_p4 = pneg %p1155_p1 }
  0x1d   : > { %p1163_p3 = pnand %p1162_p2, %p1156_p4 }
  0x1f   : > { %1166 = shalt.err (!%p1163_p3)
}
  0x20   : > { %s1185_s9 = smov 128   ;;  %s1186_s10 = smov 8  }
  0x21   : > { %1068 = dma.hbm_to_vmem [thread:$0]  (!%p1244_p5), %s1407_s5, 3072, %s213_s27, [#allocation5], %s1185_s9, %s1185_s9, %s1186_s10  }
  0x22   : > { %p1413_p9 = scmp.ne.s32.totalorder %s1411_s25, 0 }
  0x23   : > { %p1414_p10 = scmp.eq.s32.totalorder (!%p1413_p9), %s1231_s22, 0 }
  0x24   : > { %236 = sbr.rel (%p1413_p9) target bundleno = 692 (0x2b4), region = 44 }
  0x29   : > { %1172 = dma.done.wait (%p1414_p10), [#allocation3], 128   ;;  %p1415_p6 = pmov %p1414_p10 }
  0x2b   : > { %1174 = vsyncadd (%p1415_p6), [#allocation3], 4294967168  ;;  %p1416_p2 = pmov %p1415_p6 }
  0x2d   : > { %1176 = dma.done.wait (%p1416_p2), [#allocation5], 3072   ;;  %p1417_p3 = pmov %p1416_p2 }
  0x2e   : > { %p269_p11 = scmp.lt.s32.totalorder %s1231_s22, 1  ;;  %v1187_v0 = vmov 0   ;;  %v1188_v1 = vmov 0.0   ;;  %v996_v2 = vld [vmem:[%s1403_s1 + $0x28] sm:$0x33]  ;;  %vm329_vm0 = vcmask 1041408  }
  0x2f   : > { %1178 = vsyncadd (%p1417_p3), [#allocation5], 4294964224  ;;  %368 = vmatprep.mubr.bf16.mxu0 %v1187_v0  ;;  %755 = vmatprep.subr.mxu1 %v1188_v1  ;;  %v1002_v3 = vcombine.high %v996_v2, %v996_v2  ;;  %v1001_v4 = vcombine.low %v996_v2, %v996_v2  ;;  %v1090_v5 = vld [vmem:[%s1403_s1 + $0x1c] ss:$8 sps:$4 sm:$0xff]   ;;  %v284_v9 = vld [vmem:[%s1403_s1 + $0x10] sm:$0x33] }
  0x30   : > { %s1419_s22 = smov (!%p269_p11, %s1231_s22), 1  ;;  %v1092_v10 = vld [vmem:[%s1403_s1 + $0x18] ss:$8 sps:$4 sm:$0xff]   ;;  %v1008_v14 = vcombine.high %v284_v9, %v284_v9  ;;  %v1007_v15 = vcombine.low %v284_v9, %v284_v9  ;;  %vm297_vm1 = vsmask.f32 7424  ;;  %vm325_vm2 = vcmask 162816  }
  0x31   : > { %s1053_s13 = smul.u32 12, %s1419_s22  ;;  %1003 = vmatprep.subr.msk.bf16.mxu0 %vm329_vm0, %v1002_v3  ;;  %v331_v7 = vsel %vm329_vm0, %v1001_v4, 0  ;;  %v1099_v20 = vld [vmem:[%s1403_s1 + $0x4] ss:$8 sps:$4 sm:$0xff]   ;;  %v1097_v24 = vld [vmem:[%s1403_s1] ss:$8 sps:$4 sm:$0xff]  }
  0x32   : > { %349 = vmatpush1.bf16.msra.mxu0 %v331_v7  ;;  %v397_v19 = vsel %vm329_vm0, %v1007_v15, 0  ;;  %v1013_v22 = vld [vmem:[%s1403_s1 + $0x40] sm:$0x33]  ;;  %v738_v25 = vld [vmem:[#allocation4 + $0x70] sm:$0xff]  ;;  %vm449_vm3 = vcmask 1046528   ;;  %vm613_vm5 = vcmask 1045504  }
  0x33   : > { %s273_s16 = scalar_lea.vmem %s1402_s0, %s1053_s13  ;;  %350 = vmatprep.subr.bf16.mxu0 %v1090_v5  ;;  %v739_v23 = vld [vmem:[#allocation4 + $0x78] sm:$0xff]  ;;  %v1017_v26 = vcombine.high %v1013_v22, %v1013_v22  ;;  %v1016_v27 = vcombine.low %v1013_v22, %v1013_v22  ;;  %v1104_v29 = vld [vmem:[%s1403_s1 + $0x34] ss:$8 sps:$4 sm:$0xff]   ;;  %v1102_v31 = vld [vmem:[%s1403_s1 + $0x30] ss:$8 sps:$4 sm:$0xff]   ;;  %vm748_vm6 = vcmask 523264  }
  0x34   : > { %v1292_v6 = vld [vmem:[%s273_s16] sm:$0xff]   ;;  %v1296_v8 = vld [vmem:[%s273_s16 + $0x8] ss:$0 sps:$4 sm:$0x33]   ;;  %756 = vmatpush1.msra.mxu1 %v739_v23  ;;  %v1022_v30 = vld [vmem:[%s1403_s1 + $0x58] sm:$0x33] }
  0x35   : > { %v299_v11 = vshrl.u32 %v1292_v6, 16  ;;  %v301_v12 = vshll.u32 %v1292_v6, 16  ;;  %v306_v13 = vshll.u32 %v1296_v8, 16  ;;  %757 = vmatprep.subr.mxu1 %v1188_v1  ;;  %v472_v28 = vsel %vm329_vm0, %v1016_v27, 0  ;;  %v1109_v43 = vld [vmem:[%s1403_s1 + $0x4c] ss:$8 sps:$4 sm:$0xff]  }
  0x36   : > { %351 = vmatpush1.bf16.msra.mxu0 %v1092_v10  ;;  %758 = vmatpush1.msra.mxu1 %v738_v25  ;;  %v450_v32 = vrot.slane %v1292_v6, 1  ;;  %v451_v33 = vrot.slane %v1296_v8, 1  ;;  %v532_v34 = vshrl.u32 %v1296_v8, 16  ;;  %v1026_v35 = vcombine.high %v1022_v30, %v1022_v30  ;;  %v1031_v44 = vld [vmem:[%s1403_s1 + $0x70] sm:$0x33]  ;;  %v736_v58 = vld [vmem:[#allocation4 + $0x60] sm:$0xff] }
  0x37   : > { %v303_v16 = vrot.slane %v301_v12, 1  ;;  %v308_v17 = vrot.slane %v306_v13, 1  ;;  %1009 = vmatprep.subr.msk.bf16.mxu0 %vm329_vm0, %v1008_v14  ;;  %759 = vmatprep.subr.mxu1 %v1188_v1  ;;  %v1025_v36 = vcombine.low %v1022_v30, %v1022_v30  ;;  %v529_v37 = vrot.slane %v299_v11, 1  ;;  %v1107_v45 = vld [vmem:[%s1403_s1 + $0x48] ss:$8 sps:$4 sm:$0xff]   ;;  %v735_v59 = vld [vmem:[#allocation4 + $0x58] sm:$0xff] }
  0x38   : > { %v535_v38 = vrot.slane %v306_v13, 2  ;;  %v452_v39 = vsel %vm449_vm3, %v450_v32, %v451_v33  ;;  %v530_v40 = vrot.slane %v301_v12, 2  ;;  %v534_v41 = vrot.slane %v532_v34, 1  ;;  %v1114_v52 = vld [vmem:[%s1403_s1 + $0x64] ss:$8 sps:$4 sm:$0xff]   ;;  %v737_v57 = vld [vmem:[#allocation4 + $0x68] sm:$0xff] }
  0x39   : > { %v304_v18 = vor.u32 %v303_v16, %v299_v11  ;;  %v557_v42 = vsel %vm329_vm0, %v1025_v36, 0  ;;  %vm528_vm4 = vsmask.f32 6400  ;;  %v1035_v48 = vcombine.high %v1031_v44, %v1031_v44  ;;  %v1112_v53 = vld [vmem:[%s1403_s1 + $0x60] ss:$8 sps:$4 sm:$0xff]   ;;  %760 = vmatpush1.msra.mxu1 %v737_v57  ;;  %v734_v60 = vld [vmem:[#allocation4 + $0x50] sm:$0xff] }
  0x3a   : > { %v531_v46 = vor.u32 %v530_v40, %v529_v37  ;;  %v536_v47 = vor.u32 %v535_v38, %v534_v41  ;;  %v1034_v49 = vcombine.low %v1031_v44, %v1031_v44  ;;  %v614_v54 = vrot.slane %v1292_v6, 2  ;;  %761 = vmatprep.subr.mxu1 %v1188_v1  ;;  %v733_v61 = vld [vmem:[#allocation4 + $0x48] sm:$0xff]  ;;  %v732_v62 = vld [vmem:[#allocation4 + $0x40] sm:$0xff]  ;;  %v731_v63 = vld [vmem:[#allocation4 + $0x38] sm:$0xff]  ;;  %s993_s7 = sshll.u32 %s1419_s22, 2 }
  0x3b   : > { %v309_v21 = vsel %vm297_vm1, %v304_v18, %v308_v17  ;;  %v615_v55 = vrot.slane %v1296_v8, 2  ;;  %762 = vmatpush1.msra.mxu1 %v736_v58  ;;  %v729_v2 = vld [vmem:[#allocation4 + $0x28] sm:$0xff]  ;;  %v728_v3 = vld [vmem:[#allocation4 + $0x20] sm:$0xff]  ;;  %v727_v4 = vld [vmem:[#allocation4 + $0x18] sm:$0xff]  ;;  %vm1189_vm7 = vmmov 0   ;;  %vm831_vm8 = vcmask 130048   ;;  %s277_s10 = scalar_lea.vmem %s1408_s6, %s993_s7 }
  0x3c   : > { %1004 = vmatmul.mubr.msk.bf16.vlgmr.msra.gmra.mxu0 %vm325_vm2, %v309_v21  ;;  %v537_v50 = vsel %vm528_vm4, %v531_v46, %v536_v47  ;;  %v636_v51 = vsel %vm329_vm0, %v1034_v49, 0  ;;  %763 = vmatprep.subr.mxu1 %v1188_v1  ;;  %v726_v5 = vld [vmem:[#allocation4 + $0x10] sm:$0xff]  ;;  %v724_v7 = vld [vmem:[#allocation4] sm:$0xff]  ;;  %v747_v8 = vld [vmem:[#allocation4 + $0xb8] sm:$0xff]  ;;  %vm906_vm9 = vcmask 781312  }
  0x3d   : > { %415 = vmatpush1.bf16.msra.mxu0 %v397_v19  ;;  %434 = vmatprep.mubr.bf16.mxu0 %v1187_v0  ;;  %v616_v56 = vsel %vm613_vm5, %v614_v54, %v615_v55  ;;  %v746_v9 = vld [vmem:[#allocation4 + $0xb0] sm:$0xff]  ;;  %v745_v10 = vld [vmem:[#allocation4 + $0xa8] sm:$0xff]  ;;  %v744_v11 = vld [vmem:[#allocation4 + $0xa0] sm:$0xff] }
  0x3e   : > { %416 = vmatprep.subr.bf16.mxu0 %v1099_v20  ;;  %764 = vmatpush1.msra.mxu1 %v735_v59  ;;  %v743_v12 = vld [vmem:[#allocation4 + $0x98] sm:$0xff]  ;;  %v742_v13 = vld [vmem:[#allocation4 + $0x90] sm:$0xff]  ;;  %v741_v14 = vld [vmem:[#allocation4 + $0x88] sm:$0xff] }
  0x3f   : > { %765 = vmatprep.subr.mxu1 %v1188_v1  ;;  %v740_v15 = vld [vmem:[#allocation4 + $0x80] sm:$0xff]  ;;  %v704_v44 = vld [vmem:[%s1405_s3] sm:$0x3] }
  0x40   : > { %766 = vmatpush1.msra.mxu1 %v734_v60 }
  0x41   : > { %417 = vmatpush1.bf16.msra.mxu0 %v1097_v24  ;;  %767 = vmatprep.subr.mxu1 %v1188_v1 }
  0x42   : > { %1018 = vmatprep.subr.msk.bf16.mxu0 %vm329_vm0, %v1017_v26  ;;  %768 = vmatpush1.msra.mxu1 %v733_v61  ;;  %v690_v26 = vlaneseq }
  0x43   : > { %769 = vmatprep.subr.mxu1 %v1188_v1 }
  0x44   : > { %1010 = vmatmul.mubr.msk.bf16.vlgmr.msra.gmra.mxu0 %vm325_vm2, %v1292_v6  ;;  %770 = vmatpush1.msra.mxu1 %v732_v62  ;;  %v725_v6 = vld [vmem:[#allocation4 + $0x8] sm:$0xff] }
  0x45   : > { %490 = vmatpush1.bf16.msra.mxu0 %v472_v28  ;;  %509 = vmatprep.mubr.bf16.mxu0 %v1187_v0 }
  0x46   : > { %491 = vmatprep.subr.bf16.mxu0 %v1104_v29  ;;  %771 = vmatprep.subr.mxu1 %v1188_v1  ;;  %v691_v29 = vshrl.u32 %v690_v26, 7 }
  0x47   : > { %772 = vmatpush1.msra.mxu1 %v731_v63 }
  0x48   : > { %773 = vmatprep.subr.mxu1 %v1188_v1  ;;  %v692_v33 = vsub.s32 0, %v691_v29  ;;  %v696_v36 = vsub.s32 1, %v691_v29 }
  0x49   : > { %492 = vmatpush1.bf16.msra.mxu0 %v1102_v31 }
  0x4a   : > { %1027 = vmatprep.subr.msk.bf16.mxu0 %vm329_vm0, %v1026_v35  ;;  %v688_v35 = vld [vmem:[%s1404_s2] sm:$0x3] }
  0x4b   : > { %v697_v46 = vrot.slane %v688_v35, %v696_v36 }
  0x4c   : > { %1019 = vmatmul.mubr.msk.bf16.vlgmr.msra.gmra.mxu0 %vm325_vm2, %v452_v39 }
  0x4d   : > { %575 = vmatpush1.bf16.msra.mxu0 %v557_v42  ;;  %594 = vmatprep.mubr.bf16.mxu0 %v1187_v0 }
  0x4e   : > { %576 = vmatprep.subr.bf16.mxu0 %v1109_v43  ;;  %v693_v43 = vrot.slane %v688_v35, %v692_v33 }
  0x51   : > { %577 = vmatpush1.bf16.msra.mxu0 %v1107_v45 }
  0x52   : > { %1036 = vmatprep.subr.msk.bf16.mxu0 %vm329_vm0, %v1035_v48 }
  0x54   : > { %1028 = vmatmul.mubr.msk.bf16.vlgmr.msra.gmra.mxu0 %vm325_vm2, %v537_v50 }
  0x55   : > { %654 = vmatpush1.bf16.msra.mxu0 %v636_v51  ;;  %673 = vmatprep.mubr.bf16.mxu0 %v1187_v0  ;;  %v730_v0 = vld [vmem:[#allocation4 + $0x30] sm:$0xff] }
  0x56   : > { %655 = vmatprep.subr.bf16.mxu0 %v1114_v52  ;;  %774 = vmatpush1.msra.mxu1 %v730_v0  ;;  %v709_v52 = vrot.slane %v704_v44, %v692_v33 }
  0x57   : > { %775 = vmatprep.subr.mxu1 %v1188_v1 }
  0x58   : > { %776 = vmatpush1.msra.mxu1 %v729_v2 }
  0x59   : > { %656 = vmatpush1.bf16.msra.mxu0 %v1112_v53  ;;  %777 = vmatprep.subr.mxu1 %v1188_v1  ;;  %v713_v53 = vrot.slane %v704_v44, %v696_v36 }
  0x5a   : > { %1046 = vmatprep.subr.mxu0 %v1188_v1  ;;  %778 = vmatpush1.msra.mxu1 %v728_v3 }
  0x5b   : > { %779 = vmatprep.subr.mxu1 %v1188_v1 }
  0x5c   : > { %1037 = vmatmul.mubr.msk.bf16.vlgmr.msra.gmra.mxu0 %vm325_vm2, %v616_v56  ;;  %780 = vmatpush1.msra.mxu1 %v727_v4 }
  0x5d   : > { %781 = vmatprep.subr.mxu1 %v1188_v1  ;;  %1050 = vmatprep.mubr.msk.f32.mxu0 %vm1189_vm7, %v1188_v1 }
  0x5e   : > { %782 = vmatpush1.msra.mxu1 %v726_v5 }
  0x5f   : > { %783 = vmatprep.subr.mxu1 %v1188_v1 }
  0x60   : > { %784 = vmatpush1.msra.mxu1 %v725_v6 }
  0x61   : > { %785 = vmatprep.subr.mxu1 %v1188_v1 }
  0x62   : > { %786 = vmatpush1.msra.mxu1 %v724_v7 }
  0x63   : > { %803 = vmatprep.subr.mxu1 %v1188_v1 }
  0x64   : > { %804 = vmatpush2.msra.mxu1 %v747_v8 }
  0x65   : > { %805 = vmatprep.subr.mxu1 %v1188_v1 }
  0x66   : > { %806 = vmatpush2.msra.mxu1 %v746_v9 }
  0x67   : > { %807 = vmatprep.subr.mxu1 %v1188_v1 }
  0x68   : > { %808 = vmatpush2.msra.mxu1 %v745_v10 }
  0x69   : > { %809 = vmatprep.subr.mxu1 %v1188_v1 }
  0x6a   : > { %810 = vmatpush2.msra.mxu1 %v744_v11 }
  0x6b   : > { %811 = vmatprep.subr.mxu1 %v1188_v1 }
  0x6c   : > { %812 = vmatpush2.msra.mxu1 %v743_v12 }
  0x6d   : > { %813 = vmatprep.subr.mxu1 %v1188_v1 }
  0x6e   : > { %814 = vmatpush2.msra.mxu1 %v742_v13 }
  0x6f   : > { %815 = vmatprep.subr.mxu1 %v1188_v1 }
  0x70   : > { %816 = vmatpush2.msra.mxu1 %v741_v14  ;;  %v830_v14 = vld [vmem:[#allocation2] sm:$0xff] }
  0x71   : > { %817 = vmatprep.subr.mxu1 %v1188_v1 }
  0x72   : > { %818 = vmatpush2.msra.mxu1 %v740_v15 }
  0xfc   : > { %v370_v16 = vpop.f32.mrf.mxu0 }
  0xfe   : > { %v372_v17 = vpop.f32.mrf.mxu0 }
 0x100   : > { %v374_v18 = vpop.f32.mrf.mxu0 }
 0x102   : > { %v376_v19 = vpop.f32.mrf.mxu0 }
 0x104   : > { %v436_v20 = vpop.f32.mrf.mxu0 }
 0x105   : > { %v437_v32 = vadd.f32 %v436_v20, %v370_v16 }
 0x106   : > { %v438_v21 = vpop.f32.mrf.mxu0 }
 0x107   : > { %v439_v37 = vadd.f32 %v438_v21, %v372_v17 }
 0x108   : > { %v440_v22 = vpop.f32.mrf.mxu0 }
 0x109   : > { %v441_v40 = vadd.f32 %v440_v22, %v374_v18 }
 0x10a   : > { %v442_v23 = vpop.f32.mrf.mxu0 }
 0x10b   : > { %v443_v47 = vadd.f32 %v442_v23, %v376_v19 }
 0x10c   : > { %v511_v24 = vpop.f32.mrf.mxu0 }
 0x10d   : > { %v520_v38 = vadd.f32 %v511_v24, %v437_v32 }
 0x10e   : > { %v513_v25 = vpop.f32.mrf.mxu0 }
 0x10f   : > { %v521_v41 = vadd.f32 %v513_v25, %v439_v37 }
 0x110   : > { %v515_v27 = vpop.f32.mrf.mxu0 }
 0x111   : > { %v522_v48 = vadd.f32 %v515_v27, %v441_v40 }
 0x112   : > { %v517_v28 = vpop.f32.mrf.mxu0 }
 0x113   : > { %v523_v54 = vadd.f32 %v517_v28, %v443_v47 }
 0x114   : > { %v596_v30 = vpop.f32.mrf.mxu0 }
 0x115   : > { %v605_v42 = vadd.f32 %v596_v30, %v520_v38 }
 0x116   : > { %v598_v31 = vpop.f32.mrf.mxu0 }
 0x117   : > { %v606_v49 = vadd.f32 %v598_v31, %v521_v41 }
 0x118   : > { %v600_v34 = vpop.f32.mrf.mxu0 }
 0x119   : > { %v607_v55 = vadd.f32 %v600_v34, %v522_v48 }
 0x11a   : > { %v602_v39 = vpop.f32.mrf.mxu0 }
 0x11b   : > { %v608_v59 = vadd.f32 %v602_v39, %v523_v54 }
 0x11c   : > { %v675_v45 = vpop.f32.mrf.mxu0 }
 0x11d   : > { %v684_v50 = vadd.f32 %v675_v45, %v605_v42 }
 0x11e   : > { %v677_v51 = vpop.f32.mrf.mxu0 }
 0x11f   : > { %v700_v56 = vmul.f32 %v693_v43, %v684_v50  ;;  %v685_v57 = vadd.f32 %v677_v51, %v606_v49 }
 0x120   : > { %v679_v58 = vpop.f32.mrf.mxu0 }
 0x121   : > { %v701_v60 = vmul.f32 %v697_v46, %v685_v57  ;;  %v686_v61 = vadd.f32 %v679_v58, %v607_v55  ;;  %v716_v63 = vadd.f32 %v709_v52, %v700_v56 }
 0x122   : > { %v681_v62 = vpop.f32.mrf.mxu0 }
 0x123   : > { %v702_v0 = vmul.f32 %v693_v43, %v686_v61  ;;  %v687_v2 = vadd.f32 %v681_v62, %v608_v59  ;;  %v717_v3 = vadd.f32 %v713_v53, %v701_v60  ;;  %v720_v6 = vmax.f32 %v716_v63, 0.0 }
 0x125   : > { %v703_v4 = vmul.f32 %v697_v46, %v687_v2  ;;  %v721_v5 = vmax.f32 %v717_v3, 0.0  ;;  %v718_v7 = vadd.f32 %v709_v52, %v702_v0 }
 0x127   : > { %v719_v8 = vadd.f32 %v713_v53, %v703_v4  ;;  %1038 = vmatprep.mubr.msk.f32.mxu1 %vm748_vm6, %v721_v5  ;;  %v722_v10 = vmax.f32 %v718_v7, 0.0 }
 0x128   : > { %820 = vmatmul.mubr.f32.vlgmr.msra.gmra.mxu1 %v720_v6 }
 0x129   : > { %v723_v9 = vmax.f32 %v719_v8, 0.0 }
 0x12b   : > { %1039 = vmatprep.mubr.msk.f32.mxu1 %vm748_vm6, %v723_v9 }
 0x12c   : > { %825 = vmatmul.mubr.f32.gmra.mxu1 %v722_v10 }
 0x1e8   : > { %v821_v11 = vpop.f32.mrf.mxu1 }
 0x1ea   : > { %v823_v12 = vpop.f32.mrf.mxu1 }
 0x1ec   : > { %v826_v13 = vpop.f32.mrf.mxu1 }
 0x1ed   : > { %1047 = vmatpush3.msra.mxu0 %v826_v13 }
 0x1ee   : > { %v828_v15 = vpop.f32.mrf.mxu1  ;;  %1048 = vmatprep.subr.mxu0 %v1188_v1 }
 0x1ef   : > { %1049 = vmatpush3.msra.mxu0 %v821_v11 }
 0x1f0   : > { %1051 = vmatmul.mubr.msk.f32.vlgmr.msra.gmra.mxu0 %vm831_vm8, %v830_v14 }
 0x2b0   : > { %v901_v16 = vpop.f32.mrf.mxu0 }
 0x2b1   : > { %v905_v17 = vpack.c.bf16 %v901_v16, %v901_v16 }
 0x2b2   : > { %v1052_v18 = vpop.f32.mrf.mxu0 }
 0x2b3   : > { %907 = vst.msk [vmem:[%s277_s10] sm:$0xf] %vm906_vm9, %v905_v17 }
 0x2b4 PF: > { %s18_s21 = sadd.s32 1, %s1181_s21  }
 0x2b5   : > { %p15_p5 = scmp.ge.s32.totalorder %s18_s21, 4  }
 0x2b7   :  { %17 = sbr.rel (!%p15_p5) target bundleno = 2 (0x2), region = 87 }
 0x2bc   :  { %927 = vsyncpa [#allocation3], 1 }
 0x2bd   :  { %929 = vsyncpa [#allocation3 + $0x1], 1 }
 0x2be   :  { %930 = vsyncpa [#allocation5], 1 }

// kernel: light_sernet_forward.7
= control target key start
LH: loop header
LB: loop body
LE: loop exit
PB: predicated region body
PF: predicated region fallthrough
CT: control target
= control target key end

     0   :  { %13 = vsyncpa [#allocation3], 0  ;;  %s1066_s0 = inlined_call_operand.vmem [shape: bf16[2,2,32], index: 0, kind: input, shape index: {}]   ;;  %s1067_s1 = inlined_call_operand.vmem [shape: bf16[1,32,64], index: 1, kind: input, shape index: {}]   ;;  %s1068_s2 = inlined_call_operand.vmem [shape: f32[1,64], index: 2, kind: input, shape index: {}]   ;;  %s1069_s3 = inlined_call_operand.vmem [shape: f32[1,64], index: 3, kind: input, shape index: {}]   ;;  %s1070_s4 = inlined_call_operand.vmem [shape: f32[1,2], index: 4, kind: input, shape index: {}]   ;;  %s1071_s5 = inlined_call_operand.vmem [shape: f32[64,32], index: 5, kind: input, shape index: {}]   ;;  %s1072_s6 = inlined_call_operand.vmem [shape: f32[32,4], index: 6, kind: input, shape index: {}]   ;;  %s1073_s7 = inlined_call_operand.vmem [shape: f32[1,4], index: 7, kind: input, shape index: {}]   ;;  %s1074_s8 = inlined_call_operand.hbm [shape: f32[2,1,4], index: 8, kind: output, shape index: {}]  }
   0x1   :  { %15 = vsyncpa [#allocation3 + $0x1], 0  ;;  %s913_s27 = smov 0   ;;  %s915_s28 = smov 0  }
   0x2   :  { %s917_s29 = smov 0   ;;  %s919_s30 = smov 0  }
   0x3 LB: > { %s934_s9 = sadd.s32 4294967295, %s863_s30   ;;  %s682_s10 = sadd.s32 4294967294, %s863_s30   ;;  %s863_s30 = sphi %s919_s30, %s1080_s30   ;;  %s859_s29 = sphi %s917_s29, %s1079_s29   ;;  %s855_s28 = sphi %s915_s28, %s1078_s28   ;;  %s851_s27 = sphi %s913_s27, %s1077_s27  }
   0x4   : > { %s938_s11 = sadd.s32 1, %s863_s30   ;;  %s201_s12 = sadd.s32 1, %s859_s29 }
   0x5   : > { %s198_s13 = ssub.s32 %s863_s30, %s938_s11  ;;  %p211_p0 = scmp.ne.s32.totalorder %s859_s29, %s855_s28 }
   0x6   : > { %p199_p1 = scmp.eq.s32.totalorder %s198_s13, 0  ;;  %p212_p2 = scmp.eq.s32.totalorder %s934_s9, 1 }
   0x7   : > { %p217_p3 = scmp.ne.s32.totalorder %s855_s28, %s851_s27  ;;  %p218_p4 = scmp.eq.s32.totalorder %s682_s10, 1 }
   0x8   : > { %s949_s14 = scalar_select %p199_p1, %s859_s29, %s201_s12  }
   0x9   : > { %p951_p5 = por %p212_p2, %p211_p0  ;;  %p955_p6 = por %p218_p4, %p217_p3 }
   0xa   : > { %p685_p7 = scmp.ge.s32.totalorder %s863_s30, 1  ;;  %p263_p8 = scmp.lt.s32.totalorder %s863_s30, 3 }
   0xc   : > { %p264_p9 = pnand %p685_p7, %p263_p8 }
   0xd   : > { %p294_p10 = scmp.lt.s32.totalorder (!%p264_p9), %s934_s9, 1  ;;  %s292_s13 = sand.u32 (!%p264_p9), 1, %s855_s28  }
   0xe   : > { %267 = sbr.rel (%p264_p9) target bundleno = 822 (0x336), region = 52  ;;  %s695_s19 = sshll.u32 (!%p264_p9), %s934_s9, 4 }
   0xf   : > { %s293_s20 = scalar_lea.vmem (!%p264_p9), [#allocation2], %s292_s13  ;;  %s1031_s24 = scalar_lea.hbm (!%p264_p9), %s1074_s8, %s695_s19 }
  0x10   : > { %s630_s21 = sshll.u32 (!%p264_p9), %s293_s20, 4  ;;  %s631_s21 = int_to_ptr.vmem [resolvable:$true] %s630_s21 }
  0x11   : > { %s803_s26 = scalar_lea.vmem (!%p264_p9), %s631_s21, 16 }
  0x12   : > { %p804_p11 = scmp.ne.s32.totalorder (!%p264_p9), %s631_s21, %s803_s26 }
  0x13   : > { %v801_v0 = vld [vmem:[%s1067_s1 + $0x8] sm:$0xff]   ;;  %v865_v1 = vmov 0.0   ;;  %v802_v2 = vld [vmem:[%s1067_s1] sm:$0xff]   ;;  %vm866_vm0 = vmmov 0   ;;  %v383_v3 = vld [vmem:[%s1071_s5 + $0x38] sm:$0xff]  ;;  %s295_s25 = scalar_select %p294_p10, %s934_s9, 1 }
  0x14   : > { %717 = vmatprep.subr.bf16.mxu0 %v865_v1  ;;  %725 = vmatprep.subr.mxu1 %v865_v1  ;;  %v382_v4 = vld [vmem:[%s1071_s5 + $0x30] sm:$0xff]  ;;  %v381_v5 = vld [vmem:[%s1071_s5 + $0x28] sm:$0xff]  ;;  %vm315_vm1 = vcmask 261120   ;;  %v380_v6 = vld [vmem:[%s1071_s5 + $0x20] sm:$0xff]  ;;  %vm384_vm2 = vcmask 523264   ;;  %vm463_vm3 = vcmask 1041408   ;;  %p805_p12 = pnand %p804_p11, %p951_p5 }
  0x15   : > { %718 = vmatpush3.bf16.msra.mxu0 %v801_v0  ;;  %721 = vmatprep.mubr.msk.bf16.mxu0 %vm866_vm0, %v865_v1  ;;  %s296_s17 = scalar_lea.vmem %s1066_s0, %s295_s25  ;;  %v379_v8 = vld [vmem:[%s1071_s5 + $0x18] sm:$0xff]  ;;  %v378_v9 = vld [vmem:[%s1071_s5 + $0x10] sm:$0xff]  ;;  %v377_v10 = vld [vmem:[%s1071_s5 + $0x8] sm:$0xff]  ;;  %vm459_vm4 = vcmask 15360   ;;  %vm615_vm5 = vcmask 24576   ;;  %s618_s25 = scalar_lea.sflag [#allocation3], %s292_s13 }
  0x16   : > { %719 = vmatprep.subr.bf16.mxu0 %v865_v1  ;;  %726 = vmatpush3.msra.mxu1 %v383_v3  ;;  %v298_v7 = vld [vmem:[%s296_s17] sm:$0x1]  ;;  %v540_v21 = vld [vmem:[%s1072_s6 + $0x18] sm:$0xff]  ;;  %v539_v22 = vld [vmem:[%s1072_s6 + $0x10] sm:$0xff]  ;;  %p806_p13 = pneg %p805_p12  ;;  %s867_s9 = smov [#allocation2]  }
  0x17   : > { %727 = vmatprep.subr.mxu1 %v865_v1  ;;  %741 = vmatprep.mubr.msk.f32.mxu1 %vm866_vm0, %v865_v1  ;;  %v376_v11 = vld [vmem:[%s1071_s5] sm:$0xff]  ;;  %v538_v23 = vld [vmem:[%s1072_s6 + $0x8] sm:$0xff]  ;;  %s807_s10 = sshll.u32 %s867_s9, 4  ;;  %s808_s10 = int_to_ptr.vmem [resolvable:$false] %s807_s10 }
  0x18   : > { %728 = vmatpush3.msra.mxu1 %v382_v4  ;;  %v689_v12 = vld [vmem:[%s1068_s2] ss:$0 sm:$0xff]  ;;  %s809_s12 = scalar_lea.vmem %s808_s10, 32  ;;  %p810_p0 = scmp.lt.s32.totalorder %s631_s21, %s808_s10 }
  0x19   : > { %720 = vmatpush3.bf16.msra.mxu0 %v802_v2  ;;  %729 = vmatprep.subr.mxu1 %v865_v1  ;;  %v690_v14 = vld [vmem:[%s1069_s3] ss:$0 sm:$0xff]  ;;  %p811_p1 = scmp.lt.s32.totalorder %s809_s12, %s803_s26 }
  0x1a   : > { %730 = vmatpush3.msra.mxu1 %v381_v5  ;;  %749 = vmatprep.subr.mxu0 %v865_v1  ;;  %v458_v24 = vld [vmem:[%s1070_s4] sm:$0x1] }
  0x1b   : > { %731 = vmatprep.subr.mxu1 %v865_v1  ;;  %v537_v27 = vld [vmem:[%s1072_s6] sm:$0xff]  ;;  %p812_p2 = por %p811_p1, %p810_p0 }
  0x1c   : > { %722 = vmatmul.mubr.msk.bf16.vlgmr.msra.gmra.mxu0 %vm315_vm1, %v298_v7  ;;  %732 = vmatpush3.msra.mxu1 %v380_v6  ;;  %v541_v30 = vld [vmem:[%s1073_s7] sm:$0x1] }
  0x1d   : > { %733 = vmatprep.subr.mxu1 %v865_v1  ;;  %757 = vmatprep.mubr.msk.f32.mxu0 %vm866_vm0, %v865_v1  ;;  %p813_p3 = pnand %p812_p2, %p806_p13 }
  0x1e   : > { %734 = vmatpush3.msra.mxu1 %v379_v8  ;;  %750 = vmatpush3.msra.mxu0 %v540_v21 }
  0x1f   : > { %735 = vmatprep.subr.mxu1 %v865_v1  ;;  %751 = vmatprep.subr.mxu0 %v865_v1 }
  0x20   : > { %736 = vmatpush3.msra.mxu1 %v378_v9  ;;  %752 = vmatpush3.msra.mxu0 %v539_v22 }
  0x21   : > { %737 = vmatprep.subr.mxu1 %v865_v1  ;;  %753 = vmatprep.subr.mxu0 %v865_v1 }
  0x22   : > { %738 = vmatpush3.msra.mxu1 %v377_v10  ;;  %754 = vmatpush3.msra.mxu0 %v538_v23 }
  0x23   : > { %739 = vmatprep.subr.mxu1 %v865_v1  ;;  %755 = vmatprep.subr.mxu0 %v865_v1 }
  0x24   : > { %740 = vmatpush3.msra.mxu1 %v376_v11  ;;  %756 = vmatpush3.msra.mxu0 %v537_v27 }
  0x25   : > { %744 = vmatprep.subr.mxu1 %v865_v1 }
  0xdc   : > { %v353_v13 = vpop.f32.mrf.mxu0 }
  0xdd   : > { %v366_v15 = vmul.f32 %v689_v12, %v353_v13 }
  0xde   : > { %v723_v16 = vpop.f32.mrf.mxu0 }
  0xdf   : > { %v374_v17 = vadd.f32 %v690_v14, %v366_v15 }
  0xe0   : > { %v356_v18 = vpop.f32.mrf.mxu0 }
  0xe1   : > { %v375_v19 = vmax.f32 %v374_v17, 0.0 }
  0xe2   : > { %v724_v20 = vpop.f32.mrf.mxu0 }
  0xe3   : > { %742 = vmatmul.mubr.msk.f32.vlgmr.msra.gmra.mxu1 %vm384_vm2, %v375_v19 }
  0xe4   : > { %746 = vmatprep.mubr.msk.f32.mxu1 %vm866_vm0, %v865_v1 }
 0x1a3   : > { %v454_v25 = vpop.f32.mrf.mxu1 }
 0x1a4   : > { %745 = vmatpush3.msk.msra.mxu1 %vm463_vm3, %v454_v25 }
 0x1a5   : > { %v743_v26 = vpop.f32.mrf.mxu1  ;;  %747 = vmatmul.mubr.msk.f32.vlgmr.msra.gmra.mxu1 %vm459_vm4, %v458_v24 }
 0x265   : > { %v533_v28 = vpop.f32.mrf.mxu1 }
 0x266   : > { %758 = vmatmul.mubr.msk.f32.vlgmr.msra.gmra.mxu0 %vm315_vm1, %v533_v28 }
 0x267   : > { %v748_v29 = vpop.f32.mrf.mxu1 }
 0x326   : > { %v611_v31 = vpop.f32.mrf.mxu0 }
 0x327   : > { %v612_v32 = vadd.f32 %v611_v31, %v541_v30 }
 0x328   : > { %v759_v33 = vpop.f32.mrf.mxu0 }
 0x329   : > { %616 = vst.msk [vmem:[%s293_s20] sm:$0x1] %vm615_vm5, %v612_v32 }
 0x32a   : > { %816 = shalt.err (!%p813_p3)
}
 0x32b   : > { %s817_s17 = scalar_lea.hbm %s1031_s24, 16  ;;  %s821_s19 = scalar_lea.hbm %s1074_s8, 32 }
 0x32c   : > { %p818_p4 = scmp.ne.s32.totalorder %s1031_s24, %s817_s17  ;;  %p822_p9 = scmp.lt.s32.totalorder %s1031_s24, %s1074_s8 }
 0x32d   : > { %p823_p10 = scmp.lt.s32.totalorder %s821_s19, %s817_s17 }
 0x32e   : > { %p819_p7 = pnand %p818_p4, %p951_p5 }
 0x32f   : > { %p824_p11 = por %p823_p10, %p822_p9 }
 0x330   : > { %p820_p8 = pneg %p819_p7 }
 0x332   : > { %p825_p12 = pnand %p824_p11, %p820_p8 }
 0x334   : > { %828 = shalt.err (!%p825_p12)
}
 0x335   : > { %760 = dma.vmem_to_hbm [thread:$0]  (%p951_p5), %s631_s21, 16, %s1031_s24, %s618_s25  }
 0x336 PF: > { %p766_p13 = scmp.ge.s32.totalorder %s863_s30, 2  ;;  %s642_s23 = sand.u32 1, %s851_s27  }
 0x337   : > { %s643_s26 = scalar_lea.sflag [#allocation3], %s642_s23 }
 0x338   : > { %p763_p0 = pnand %p766_p13, %p955_p6 }
 0x33a   : > { %p764_p1 = pneg %p763_p0 }
 0x33c   : > { %846 = dma.done.wait (%p764_p1), %s643_s26, 16  }
 0x33d   : > { %848 = vsyncadd (%p764_p1), %s643_s26, 4294967280  ;;  %p18_p2 = scmp.ge.s32.totalorder %s938_s11, 4   ;;  %s1077_s27 = smov %s855_s28 }
 0x33e   : > { %s1078_s28 = smov %s859_s29  ;;  %s1079_s29 = smov %s949_s14 }
 0x33f   : > { %s1080_s30 = smov %s938_s11  ;;  %20 = sbr.rel (!%p18_p2) target bundleno = 3 (0x3), region = 87 }
 0x344   :  { %647 = vsyncpa [#allocation3], 1 }
 0x345   :  { %649 = vsyncpa [#allocation3 + $0x1], 1 }

// kernel: light_sernet_forward.5
= control target key start
LH: loop header
LB: loop body
LE: loop exit
PB: predicated region body
PF: predicated region fallthrough
CT: control target
= control target key end

     0   :  { %s1094_s21 = smov 0   ;;  %s1269_s0 = inlined_call_operand.vmem [shape: bf16[2,10,120], index: 0, kind: input, shape index: {}]   ;;  %s1270_s1 = inlined_call_operand.vmem [shape: bf16[3,120,64], index: 1, kind: input, shape index: {}]   ;;  %s1271_s2 = inlined_call_operand.vmem [shape: f32[1,64], index: 2, kind: input, shape index: {}]   ;;  %s1272_s3 = inlined_call_operand.vmem [shape: f32[1,64], index: 3, kind: input, shape index: {}]   ;;  %s1273_s4 = inlined_call_operand.vmem [shape: f32[4,8], index: 4, kind: input, shape index: {}]   ;;  %s1274_s5 = inlined_call_operand.vmem [shape: f32[64,32], index: 5, kind: input, shape index: {}]   ;;  %s1275_s6 = inlined_call_operand.vmem [shape: bf16[2,4,32], index: 6, kind: output, shape index: {}]  }
   0x1 LB: > { %s819_s22 = sadd.s32 4294967295, %s1055_s21   ;;  %p823_p0 = scmp.ge.s32.totalorder %s1055_s21, 1  ;;  %s1055_s21 = sphi %s1094_s21, %s16_s21  }
   0x2   : > { %p212_p1 = scmp.lt.s32.totalorder %s1055_s21, 3 }
   0x4   : > { %p213_p2 = pnand %p823_p0, %p212_p1 }
   0x5   : > { %p241_p3 = scmp.lt.s32.totalorder (!%p213_p2), %s819_s22, 1 }
   0x6   : > { %216 = sbr.rel (%p213_p2) target bundleno = 667 (0x29b), region = 44 }
   0xb   : > { %v1024_v0 = vld [vmem:[%s1270_s1 + $0x74] ss:$0 sps:$4 sm:$0xff]   ;;  %vm345_vm0 = vcmask 1043456   ;;  %v1057_v1 = vmov 0.0   ;;  %v1025_v2 = vld [vmem:[%s1270_s1 + $0x38] ss:$0 sps:$4 sm:$0xff]  }
   0xc   : > { %930 = vmatprep.subr.bf16.mxu0 %v1057_v1  ;;  %950 = vmatprep.subr.bf16.mxu1 %v1057_v1  ;;  %v347_v3 = vsel %vm345_vm0, %v1024_v0, 0  ;;  %v438_v4 = vsel %vm345_vm0, %v1025_v2, 0  ;;  %v1026_v5 = vld [vmem:[%s1270_s1 + $0x6c] sm:$0xff]   ;;  %vm1058_vm1 = vmmov 0   ;;  %v1028_v7 = vld [vmem:[%s1270_s1 + $0x64] sm:$0xff]   ;;  %s1277_s22 = smov (!%p241_p3, %s819_s22), 1 }
   0xd   : > { %931 = vmatpush3.bf16.msra.mxu0 %v347_v3  ;;  %951 = vmatpush3.bf16.msra.mxu1 %v438_v4  ;;  %v1027_v6 = vld [vmem:[%s1270_s1 + $0x30] sm:$0xff]   ;;  %v1029_v8 = vld [vmem:[%s1270_s1 + $0x28] sm:$0xff]   ;;  %s891_s11 = sshll.u32 %s1277_s22, 3  ;;  %v1030_v9 = vld [vmem:[%s1270_s1 + $0x5c] sm:$0xff]   ;;  %vm341_vm2 = vcmask 982016   ;;  %vm614_vm3 = vcmask 523264  }
   0xe   : > { %932 = vmatprep.subr.bf16.mxu0 %v1057_v1  ;;  %952 = vmatprep.subr.bf16.mxu1 %v1057_v1  ;;  %v1031_v10 = vld [vmem:[%s1270_s1 + $0x20] sm:$0xff]   ;;  %s245_s18 = scalar_lea.vmem %s1269_s0, %s891_s11  ;;  %v1032_v11 = vld [vmem:[%s1270_s1 + $0x54] sm:$0xff]   ;;  %v1034_v16 = vld [vmem:[%s1270_s1 + $0x4c] sm:$0xff]   ;;  %vm689_vm4 = vcmask 64512   ;;  %s826_s7 = sshll.u32 %s1277_s22, 1  ;;  %vm764_vm5 = vcmask 254976  }
   0xf   : > { %946 = vmatprep.mubr.msk.bf16.mxu0 %vm1058_vm1, %v1057_v1  ;;  %966 = vmatprep.mubr.msk.bf16.mxu1 %vm1058_vm1, %v1057_v1  ;;  %v251_v12 = vld [vmem:[%s245_s18] sm:$0xf]  ;;  %v1033_v13 = vld [vmem:[%s1270_s1 + $0x18] sm:$0xff]   ;;  %v252_v14 = vld [vmem:[%s245_s18 + $0x4] sm:$0x1]  ;;  %s249_s10 = scalar_lea.vmem %s1275_s6, %s826_s7 }
  0x10   : > { %v842_v15 = vcombine.low %v251_v12, %v252_v14  ;;  %v1035_v17 = vld [vmem:[%s1270_s1 + $0x10] sm:$0xff]   ;;  %v1036_v19 = vld [vmem:[%s1270_s1 + $0x44] sm:$0xff]   ;;  %v1038_v23 = vld [vmem:[%s1270_s1 + $0x3c] sm:$0xff]  }
  0x11   : > { %933 = vmatpush3.bf16.msra.mxu0 %v1026_v5  ;;  %953 = vmatpush3.bf16.msra.mxu1 %v1027_v6  ;;  %v1037_v20 = vld [vmem:[%s1270_s1 + $0x8] sm:$0xff]   ;;  %v1039_v24 = vld [vmem:[%s1270_s1] sm:$0xff]   ;;  %v1041_v25 = vld [vmem:[%s1270_s1 + $0xb0] ss:$0 sps:$4 sm:$0xff]  }
  0x12   : > { %934 = vmatprep.subr.bf16.mxu0 %v1057_v1  ;;  %954 = vmatprep.subr.bf16.mxu1 %v1057_v1  ;;  %v292_v18 = vshll.u32 %v842_v15, 16  ;;  %v290_v21 = vshrl.u32 %v842_v15, 16  ;;  %v546_v27 = vsel %vm345_vm0, %v1041_v25, 0  ;;  %v1042_v28 = vld [vmem:[%s1270_s1 + $0xa8] sm:$0xff]   ;;  %v1043_v29 = vld [vmem:[%s1270_s1 + $0xa0] sm:$0xff]   ;;  %v1044_v30 = vld [vmem:[%s1270_s1 + $0x98] sm:$0xff]  }
  0x13   : > { %v1045_v31 = vld [vmem:[%s1270_s1 + $0x90] sm:$0xff]   ;;  %v1046_v32 = vld [vmem:[%s1270_s1 + $0x88] sm:$0xff]   ;;  %v1047_v33 = vld [vmem:[%s1270_s1 + $0x80] sm:$0xff]   ;;  %v496_v35 = vrot.slane %v842_v15, 1 }
  0x14   : > { %v294_v22 = vrot.slane %v292_v18, 1  ;;  %v1048_v34 = vld [vmem:[%s1270_s1 + $0x78] sm:$0xff]   ;;  %v612_v37 = vld [vmem:[%s1274_s5 + $0x30] sm:$0xff]  ;;  %v611_v38 = vld [vmem:[%s1274_s5 + $0x28] sm:$0xff] }
  0x15   : > { %935 = vmatpush3.bf16.msra.mxu0 %v1028_v7  ;;  %955 = vmatpush3.bf16.msra.mxu1 %v1029_v8  ;;  %v613_v36 = vld [vmem:[%s1274_s5 + $0x38] sm:$0xff]  ;;  %v610_v39 = vld [vmem:[%s1274_s5 + $0x20] sm:$0xff]  ;;  %v608_v41 = vld [vmem:[%s1274_s5 + $0x10] sm:$0xff] }
  0x16   : > { %936 = vmatprep.subr.bf16.mxu0 %v1057_v1  ;;  %956 = vmatprep.subr.bf16.mxu1 %v1057_v1  ;;  %v295_v26 = vor.u32 %v294_v22, %v290_v21  ;;  %v609_v40 = vld [vmem:[%s1274_s5 + $0x18] sm:$0xff]  ;;  %v607_v42 = vld [vmem:[%s1274_s5 + $0x8] sm:$0xff]  ;;  %v606_v43 = vld [vmem:[%s1274_s5] sm:$0xff] }
  0x17   : > { %v885_v54 = vld [vmem:[%s1271_s2] ss:$0 sm:$0xff] }
  0x18   : > { %v886_v56 = vld [vmem:[%s1272_s3] ss:$0 sm:$0xff] }
  0x19   : > { %937 = vmatpush3.bf16.msra.mxu0 %v1030_v9  ;;  %957 = vmatpush3.bf16.msra.mxu1 %v1031_v10  ;;  %v688_v63 = vld [vmem:[%s1273_s4] sm:$0xf] }
  0x1a   : > { %938 = vmatprep.subr.bf16.mxu0 %v1057_v1  ;;  %958 = vmatprep.subr.bf16.mxu1 %v1057_v1 }
  0x1d   : > { %939 = vmatpush3.bf16.msra.mxu0 %v1032_v11  ;;  %959 = vmatpush3.bf16.msra.mxu1 %v1033_v13 }
  0x1e   : > { %940 = vmatprep.subr.bf16.mxu0 %v1057_v1  ;;  %960 = vmatprep.subr.bf16.mxu1 %v1057_v1 }
  0x21   : > { %941 = vmatpush3.bf16.msra.mxu0 %v1034_v16  ;;  %961 = vmatpush3.bf16.msra.mxu1 %v1035_v17 }
  0x22   : > { %942 = vmatprep.subr.bf16.mxu0 %v1057_v1  ;;  %962 = vmatprep.subr.bf16.mxu1 %v1057_v1 }
  0x25   : > { %943 = vmatpush3.bf16.msra.mxu0 %v1036_v19  ;;  %963 = vmatpush3.bf16.msra.mxu1 %v1037_v20 }
  0x26   : > { %944 = vmatprep.subr.bf16.mxu0 %v1057_v1  ;;  %964 = vmatprep.subr.bf16.mxu1 %v1057_v1 }
  0x29   : > { %945 = vmatpush3.bf16.msra.mxu0 %v1038_v23  ;;  %965 = vmatpush3.bf16.msra.mxu1 %v1039_v24 }
  0x2a   : > { %970 = vmatprep.subr.bf16.mxu0 %v1057_v1  ;;  %990 = vmatprep.subr.mxu1 %v1057_v1 }
  0x2c   : > { %947 = vmatmul.mubr.msk.bf16.vlgmr.msra.gmra.mxu0 %vm341_vm2, %v295_v26  ;;  %967 = vmatmul.mubr.msk.bf16.vlgmr.msra.gmra.mxu1 %vm341_vm2, %v251_v12 }
  0x2d   : > { %971 = vmatpush3.bf16.msra.mxu0 %v546_v27  ;;  %986 = vmatprep.mubr.msk.bf16.mxu0 %vm1058_vm1, %v1057_v1 }
  0x2e   : > { %972 = vmatprep.subr.bf16.mxu0 %v1057_v1  ;;  %1006 = vmatprep.mubr.msk.f32.mxu1 %vm1058_vm1, %v1057_v1 }
  0x2f   : > { %991 = vmatpush3.msra.mxu1 %v613_v36 }
  0x30   : > { %992 = vmatprep.subr.mxu1 %v1057_v1 }
  0x31   : > { %973 = vmatpush3.bf16.msra.mxu0 %v1042_v28  ;;  %993 = vmatpush3.msra.mxu1 %v612_v37 }
  0x32   : > { %974 = vmatprep.subr.bf16.mxu0 %v1057_v1  ;;  %994 = vmatprep.subr.mxu1 %v1057_v1 }
  0x33   : > { %995 = vmatpush3.msra.mxu1 %v611_v38 }
  0x34   : > { %996 = vmatprep.subr.mxu1 %v1057_v1 }
  0x35   : > { %975 = vmatpush3.bf16.msra.mxu0 %v1043_v29  ;;  %997 = vmatpush3.msra.mxu1 %v610_v39 }
  0x36   : > { %976 = vmatprep.subr.bf16.mxu0 %v1057_v1  ;;  %998 = vmatprep.subr.mxu1 %v1057_v1 }
  0x37   : > { %999 = vmatpush3.msra.mxu1 %v609_v40 }
  0x38   : > { %1000 = vmatprep.subr.mxu1 %v1057_v1 }
  0x39   : > { %977 = vmatpush3.bf16.msra.mxu0 %v1044_v30  ;;  %1001 = vmatpush3.msra.mxu1 %v608_v41 }
  0x3a   : > { %978 = vmatprep.subr.bf16.mxu0 %v1057_v1  ;;  %1002 = vmatprep.subr.mxu1 %v1057_v1 }
  0x3b   : > { %1003 = vmatpush3.msra.mxu1 %v607_v42 }
  0x3c   : > { %1004 = vmatprep.subr.mxu1 %v1057_v1 }
  0x3d   : > { %979 = vmatpush3.bf16.msra.mxu0 %v1045_v31  ;;  %1005 = vmatpush3.msra.mxu1 %v606_v43 }
  0x3e   : > { %980 = vmatprep.subr.bf16.mxu0 %v1057_v1  ;;  %1009 = vmatprep.subr.mxu1 %v1057_v1 }
  0x41   : > { %981 = vmatpush3.bf16.msra.mxu0 %v1046_v32 }
  0x42   : > { %982 = vmatprep.subr.bf16.mxu0 %v1057_v1 }
  0x45   : > { %983 = vmatpush3.bf16.msra.mxu0 %v1047_v33 }
  0x46   : > { %984 = vmatprep.subr.bf16.mxu0 %v1057_v1 }
  0x49   : > { %985 = vmatpush3.bf16.msra.mxu0 %v1048_v34 }
  0x4c   : > { %987 = vmatmul.mubr.msk.bf16.vlgmr.msra.gmra.mxu0 %vm341_vm2, %v496_v35 }
  0xec   : > { %v383_v44 = vpop.f32.mrf.mxu0  ;;  %v474_v45 = vpop.f32.mrf.mxu1 }
  0xed   : > { %v475_v52 = vadd.f32 %v474_v45, %v383_v44 }
  0xee   : > { %v948_v46 = vpop.f32.mrf.mxu0  ;;  %v968_v47 = vpop.f32.mrf.mxu1 }
  0xf0   : > { %v386_v48 = vpop.f32.mrf.mxu0  ;;  %v477_v49 = vpop.f32.mrf.mxu1 }
  0xf2   : > { %v949_v50 = vpop.f32.mrf.mxu0  ;;  %v969_v51 = vpop.f32.mrf.mxu1 }
 0x10c   : > { %v582_v53 = vpop.f32.mrf.mxu0 }
 0x10d   : > { %v588_v55 = vadd.f32 %v582_v53, %v475_v52 }
 0x10e   : > { %v988_v57 = vpop.f32.mrf.mxu0 }
 0x10f   : > { %v596_v58 = vmul.f32 %v885_v54, %v588_v55 }
 0x110   : > { %v585_v59 = vpop.f32.mrf.mxu0 }
 0x111   : > { %v604_v60 = vadd.f32 %v886_v56, %v596_v58 }
 0x112   : > { %v989_v61 = vpop.f32.mrf.mxu0 }
 0x113   : > { %v605_v62 = vmax.f32 %v604_v60, 0.0 }
 0x115   : > { %1007 = vmatmul.mubr.msk.f32.vlgmr.msra.gmra.mxu1 %vm614_vm3, %v605_v62 }
 0x116   : > { %1011 = vmatprep.mubr.msk.f32.mxu1 %vm1058_vm1, %v1057_v1 }
 0x1d5   : > { %v684_v0 = vpop.f32.mrf.mxu1 }
 0x1d6   : > { %1010 = vmatpush3.msra.mxu1 %v684_v0 }
 0x1d7   : > { %v1008_v2 = vpop.f32.mrf.mxu1  ;;  %1012 = vmatmul.mubr.msk.f32.vlgmr.msra.gmra.mxu1 %vm689_vm4, %v688_v63 }
 0x297   : > { %v759_v3 = vpop.f32.mrf.mxu1 }
 0x298   : > { %v763_v4 = vpack.c.bf16 %v759_v3, %v759_v3 }
 0x299   : > { %v1013_v5 = vpop.f32.mrf.mxu1 }
 0x29a   : > { %765 = vst.msk [vmem:[%s249_s10] sm:$0x3] %vm764_vm5, %v763_v4 }
 0x29b PF: > { %s16_s21 = sadd.s32 1, %s1055_s21  }
 0x29c   : > { %p13_p4 = scmp.ge.s32.totalorder %s16_s21, 4  }
 0x29e   :  { %15 = sbr.rel (!%p13_p4) target bundleno = 1 (0x1), region = 76 }

// kernel: light_sernet_forward.6
= control target key start
LH: loop header
LB: loop body
LE: loop exit
PB: predicated region body
PF: predicated region fallthrough
CT: control target
= control target key end

     0   :  { %s871_s21 = smov 0   ;;  %s983_s0 = inlined_call_operand.vmem [shape: bf16[2,6,48], index: 0, kind: input, shape index: {}]   ;;  %s984_s1 = inlined_call_operand.vmem [shape: bf16[3,48,64], index: 1, kind: input, shape index: {}]   ;;  %s985_s2 = inlined_call_operand.vmem [shape: f32[1,64], index: 2, kind: input, shape index: {}]   ;;  %s986_s3 = inlined_call_operand.vmem [shape: f32[1,64], index: 3, kind: input, shape index: {}]   ;;  %s987_s4 = inlined_call_operand.vmem [shape: f32[2,4], index: 4, kind: input, shape index: {}]   ;;  %s988_s5 = inlined_call_operand.vmem [shape: f32[64,32], index: 5, kind: input, shape index: {}]   ;;  %s989_s6 = inlined_call_operand.vmem [shape: bf16[2,2,32], index: 6, kind: output, shape index: {}]  }
   0x1 LB: > { %s691_s22 = sadd.s32 4294967295, %s832_s21   ;;  %p695_p0 = scmp.ge.s32.totalorder %s832_s21, 1  ;;  %s832_s21 = sphi %s871_s21, %s16_s21  }
   0x2   : > { %p211_p1 = scmp.lt.s32.totalorder %s832_s21, 3 }
   0x4   : > { %p212_p2 = pnand %p695_p0, %p211_p1 }
   0x5   : > { %p238_p3 = scmp.lt.s32.totalorder (!%p212_p2), %s691_s22, 1 }
   0x6   : > { %215 = sbr.rel (%p212_p2) target bundleno = 627 (0x273), region = 44 }
   0xb   : > { %v816_v0 = vld [vmem:[%s984_s1 + $0x28] sm:$0xff]   ;;  %v834_v1 = vmov 0.0   ;;  %v817_v2 = vld [vmem:[%s984_s1 + $0x10] sm:$0xff]   ;;  %v818_v3 = vld [vmem:[%s984_s1 + $0x20] sm:$0xff]   ;;  %vm835_vm0 = vmmov 0   ;;  %s991_s22 = smov (!%p238_p3, %s691_s22), 1 }
   0xc   : > { %752 = vmatprep.subr.bf16.mxu0 %v834_v1  ;;  %762 = vmatprep.subr.bf16.mxu1 %v834_v1  ;;  %v819_v4 = vld [vmem:[%s984_s1 + $0x8] sm:$0xff]   ;;  %v820_v5 = vld [vmem:[%s984_s1 + $0x18] sm:$0xff]   ;;  %s696_s9 = sshll.u32 %s991_s22, 2  ;;  %v821_v6 = vld [vmem:[%s984_s1] sm:$0xff]   ;;  %vm288_vm1 = vcmask 392192   ;;  %vm488_vm2 = vcmask 523264   ;;  %s244_s25 = scalar_lea.vmem %s989_s6, %s991_s22 }
   0xd   : > { %753 = vmatpush3.bf16.msra.mxu0 %v816_v0  ;;  %758 = vmatprep.mubr.msk.bf16.mxu0 %vm835_vm0, %v834_v1  ;;  %s241_s14 = scalar_lea.vmem %s983_s0, %s696_s9  ;;  %v823_v12 = vld [vmem:[%s984_s1 + $0x40] sm:$0xff]   ;;  %v824_v14 = vld [vmem:[%s984_s1 + $0x38] sm:$0xff]   ;;  %v825_v15 = vld [vmem:[%s984_s1 + $0x30] sm:$0xff]   ;;  %vm567_vm3 = vcmask 1043456   ;;  %vm563_vm4 = vcmask 31744   ;;  %vm642_vm5 = vcmask 253952  }
   0xe   : > { %763 = vmatpush3.bf16.msra.mxu1 %v817_v2  ;;  %754 = vmatprep.subr.bf16.mxu0 %v834_v1  ;;  %v246_v7 = vld [vmem:[%s241_s14] sm:$0x7]  ;;  %v487_v17 = vld [vmem:[%s988_s5 + $0x38] sm:$0xff]  ;;  %v486_v18 = vld [vmem:[%s988_s5 + $0x30] sm:$0xff] }
   0xf   : > { %764 = vmatprep.subr.bf16.mxu1 %v834_v1  ;;  %768 = vmatprep.mubr.msk.bf16.mxu1 %vm835_vm0, %v834_v1  ;;  %v703_v8 = vcombine.low %v246_v7, %v246_v7  ;;  %v485_v19 = vld [vmem:[%s988_s5 + $0x28] sm:$0xff]  ;;  %v484_v20 = vld [vmem:[%s988_s5 + $0x20] sm:$0xff]  ;;  %v483_v21 = vld [vmem:[%s988_s5 + $0x18] sm:$0xff] }
  0x10   : > { %v482_v22 = vld [vmem:[%s988_s5 + $0x10] sm:$0xff]  ;;  %v481_v23 = vld [vmem:[%s988_s5 + $0x8] sm:$0xff]  ;;  %v480_v24 = vld [vmem:[%s988_s5] sm:$0xff] }
  0x11   : > { %755 = vmatpush3.bf16.msra.mxu0 %v818_v3  ;;  %v264_v9 = vshrl.u32 %v703_v8, 16  ;;  %v266_v10 = vshll.u32 %v703_v8, 16  ;;  %v400_v16 = vrot.slane %v703_v8, 1  ;;  %v722_v35 = vld [vmem:[%s985_s2] ss:$0 sm:$0xff] }
  0x12   : > { %765 = vmatpush3.bf16.msra.mxu1 %v819_v4  ;;  %756 = vmatprep.subr.bf16.mxu0 %v834_v1  ;;  %v723_v37 = vld [vmem:[%s986_s3] ss:$0 sm:$0xff] }
  0x13   : > { %766 = vmatprep.subr.bf16.mxu1 %v834_v1  ;;  %v268_v11 = vrot.slane %v266_v10, 1  ;;  %v562_v44 = vld [vmem:[%s987_s4] sm:$0x3] }
  0x15   : > { %757 = vmatpush3.bf16.msra.mxu0 %v820_v5  ;;  %v269_v13 = vor.u32 %v268_v11, %v264_v9 }
  0x16   : > { %767 = vmatpush3.bf16.msra.mxu1 %v821_v6  ;;  %772 = vmatprep.subr.bf16.mxu0 %v834_v1 }
  0x17   : > { %782 = vmatprep.subr.mxu1 %v834_v1 }
  0x18   : > { %759 = vmatmul.mubr.msk.bf16.vlgmr.msra.gmra.mxu0 %vm288_vm1, %v269_v13 }
  0x19   : > { %769 = vmatmul.mubr.msk.bf16.vlgmr.msra.gmra.mxu1 %vm288_vm1, %v246_v7  ;;  %773 = vmatpush3.bf16.msra.mxu0 %v823_v12 }
  0x1a   : > { %798 = vmatprep.mubr.msk.f32.mxu1 %vm835_vm0, %v834_v1  ;;  %778 = vmatprep.mubr.msk.bf16.mxu0 %vm835_vm0, %v834_v1 }
  0x1b   : > { %774 = vmatprep.subr.bf16.mxu0 %v834_v1  ;;  %783 = vmatpush3.msra.mxu1 %v487_v17 }
  0x1c   : > { %784 = vmatprep.subr.mxu1 %v834_v1 }
  0x1d   : > { %775 = vmatpush3.bf16.msra.mxu0 %v824_v14  ;;  %785 = vmatpush3.msra.mxu1 %v486_v18 }
  0x1e   : > { %776 = vmatprep.subr.bf16.mxu0 %v834_v1  ;;  %786 = vmatprep.subr.mxu1 %v834_v1 }
  0x1f   : > { %787 = vmatpush3.msra.mxu1 %v485_v19 }
  0x20   : > { %788 = vmatprep.subr.mxu1 %v834_v1 }
  0x21   : > { %777 = vmatpush3.bf16.msra.mxu0 %v825_v15  ;;  %789 = vmatpush3.msra.mxu1 %v484_v20 }
  0x22   : > { %801 = vmatprep.subr.mxu0 %v834_v1  ;;  %790 = vmatprep.subr.mxu1 %v834_v1 }
  0x23   : > { %791 = vmatpush3.msra.mxu1 %v483_v21 }
  0x24   : > { %779 = vmatmul.mubr.msk.bf16.vlgmr.msra.gmra.mxu0 %vm288_vm1, %v400_v16  ;;  %792 = vmatprep.subr.mxu1 %v834_v1 }
  0x25   : > { %803 = vmatprep.mubr.msk.f32.mxu0 %vm835_vm0, %v834_v1  ;;  %793 = vmatpush3.msra.mxu1 %v482_v22 }
  0x26   : > { %794 = vmatprep.subr.mxu1 %v834_v1 }
  0x27   : > { %795 = vmatpush3.msra.mxu1 %v481_v23 }
  0x28   : > { %796 = vmatprep.subr.mxu1 %v834_v1 }
  0x29   : > { %797 = vmatpush3.msra.mxu1 %v480_v24 }
  0xd8   : > { %v326_v27 = vpop.f32.mrf.mxu0 }
  0xd9   : > { %v387_v25 = vpop.f32.mrf.mxu1 }
  0xda   : > { %v760_v29 = vpop.f32.mrf.mxu0  ;;  %v388_v33 = vadd.f32 %v387_v25, %v326_v27 }
  0xdb   : > { %v770_v26 = vpop.f32.mrf.mxu1 }
  0xdc   : > { %v329_v31 = vpop.f32.mrf.mxu0 }
  0xdd   : > { %v390_v28 = vpop.f32.mrf.mxu1 }
  0xde   : > { %v761_v32 = vpop.f32.mrf.mxu0 }
  0xdf   : > { %v771_v30 = vpop.f32.mrf.mxu1 }
  0xe4   : > { %v456_v34 = vpop.f32.mrf.mxu0 }
  0xe5   : > { %v462_v36 = vadd.f32 %v456_v34, %v388_v33 }
  0xe6   : > { %v780_v38 = vpop.f32.mrf.mxu0 }
  0xe7   : > { %v470_v39 = vmul.f32 %v722_v35, %v462_v36 }
  0xe8   : > { %v459_v40 = vpop.f32.mrf.mxu0 }
  0xe9   : > { %v478_v41 = vadd.f32 %v723_v37, %v470_v39 }
  0xea   : > { %v781_v42 = vpop.f32.mrf.mxu0 }
  0xeb   : > { %v479_v43 = vmax.f32 %v478_v41, 0.0 }
  0xed   : > { %799 = vmatmul.mubr.msk.f32.vlgmr.msra.gmra.mxu1 %vm488_vm2, %v479_v43 }
 0x1ad   : > { %v558_v45 = vpop.f32.mrf.mxu1 }
 0x1ae   : > { %802 = vmatpush3.msk.msra.mxu0 %vm567_vm3, %v558_v45 }
 0x1af   : > { %v800_v46 = vpop.f32.mrf.mxu1  ;;  %804 = vmatmul.mubr.msk.f32.vlgmr.msra.gmra.mxu0 %vm563_vm4, %v562_v44 }
 0x26f   : > { %v637_v47 = vpop.f32.mrf.mxu0 }
 0x270   : > { %v641_v48 = vpack.c.bf16 %v637_v47, %v637_v47 }
 0x271   : > { %v805_v49 = vpop.f32.mrf.mxu0 }
 0x272   : > { %643 = vst.msk [vmem:[%s244_s25] sm:$0x1] %vm642_vm5, %v641_v48 }
 0x273 PF: > { %s16_s21 = sadd.s32 1, %s832_s21  }
 0x274   : > { %p13_p4 = scmp.ge.s32.totalorder %s16_s21, 4  }
 0x276   :  { %15 = sbr.rel (!%p13_p4) target bundleno = 1 (0x1), region = 76 }

</bundles_post_ra>
